<compile_context>
chip_gen: v5e
topology: v5e:2x2
jax: 0.10.0
libtpu: 0.0.40
codegen_flags: <defaults>
</compile_context>

<pallas_src>
import functools

import jax
import jax.numpy as jnp
from jax.experimental import pallas as pl
from jax.experimental.pallas import tpu as pltpu


def _silu(x):
    return x * jax.nn.sigmoid(x)


def _rms_norm(x, w):
    ms = jnp.mean(x * x, axis=-1, keepdims=True)
    return x * jax.lax.rsqrt(ms + 1e-6) * w


# ---------------------------------------------------------------------------
# Fused CALayer kernel (one (batch, query-tile) cell per grid step).
# ---------------------------------------------------------------------------
def ca_layer_kernel(
    seq_q_ref,   # (1, tq, D)   input dtype
    seq_k_ref,   # (1, Lk, D)
    mods_ref,    # (1, 6, D)    f32 precomputed adaLN chunks
    bias_ref,    # (1, 1, Lk)   f32 additive key-mask bias (0 / -1e30)
    n1_w_ref,    # (1, D)       f32
    nk_w_ref,    # (1, D)       f32
    n2_w_ref,    # (1, D)       f32
    wq_ref,      # (D, D)       bf16 (1/sqrt(dh) folded in)
    bq_ref,      # (1, D)       f32  (1/sqrt(dh) folded in)
    wk_ref,      # (D, D)       bf16
    bk_ref,      # (1, D)       f32
    wv_ref,      # (D, D)       bf16
    bv_ref,      # (1, D)       f32
    wo_ref,      # (D, D)       bf16
    bo_ref,      # (1, D)       f32
    w1_ref,      # (C, D, hc)   bf16 (GLU x1 half -> SiLU)
    w2_ref,      # (C, D, hc)   bf16 (GLU x2 half -> gate)
    wout_ref,    # (C, hc, D)   bf16
    out_ref,     # (1, tq, D)
    o_all_ref,   # scratch (tq, D) f32: concatenated per-head attn outputs
    *,
    num_heads,
):
    f32, bf16 = jnp.float32, jnp.bfloat16
    tq, D = seq_q_ref.shape[1], seq_q_ref.shape[2]
    Lk = seq_k_ref.shape[1]
    H = num_heads
    dh = D // H
    C = w1_ref.shape[0]

    seq_q = seq_q_ref[0].astype(f32)              # (tq, D)
    seq_k = seq_k_ref[0].astype(f32)              # (Lk, D)
    mods = mods_ref[0]                            # (6, D) f32
    shift_msa, scale_msa, gate_msa = mods[0:1], mods[1:2], mods[2:3]
    shift_mlp, scale_mlp, gate_mlp = mods[3:4], mods[4:5], mods[5:6]

    # ---- cross-attention branch --------------------------------------------
    xq = _rms_norm(seq_q, n1_w_ref[...]) * (1.0 + scale_msa) + shift_msa
    kk = _rms_norm(seq_k, nk_w_ref[...])
    xq_b = xq.astype(bf16)
    kk_b = kk.astype(bf16)

    # Full-width projections (fill the MXU N dimension); per-head views are
    # static contiguous lane slices of the projected tensors.
    qall = (jnp.dot(xq_b, wq_ref[...], preferred_element_type=f32)
            + bq_ref[...]).astype(bf16)           # (tq, D)
    kall = (jnp.dot(kk_b, wk_ref[...], preferred_element_type=f32)
            + bk_ref[...]).astype(bf16)           # (Lk, D)
    vall = (jnp.dot(kk_b, wv_ref[...], preferred_element_type=f32)
            + bv_ref[...]).astype(bf16)           # (Lk, D)

    # Hoisted key-mask bias broadcast (no per-head re-broadcast).
    bias_full = jnp.broadcast_to(bias_ref[0], (tq, Lk))

    nt = (((1,), (1,)), ((), ()))                 # q @ k^T (contract minor)
    # Static head loop: static lane slices stay aligned and each head writes
    # straight into VMEM scratch, so no big f32 accumulator is live across
    # head iterations.
    # TODO(synk): add flash-style Lk tiling (online softmax) for long key
    # sequences so the (tq, Lk) f32 score matrix stays bounded.
    for h in range(H):
        sl = slice(h * dh, (h + 1) * dh)
        qh = qall[:, sl]                          # (tq, dh)
        kh = kall[:, sl]                          # (Lk, dh)
        vh = vall[:, sl]                          # (Lk, dh)
        s = jax.lax.dot_general(qh, kh, nt,
                                preferred_element_type=f32) + bias_full
        m = jnp.max(s, axis=-1, keepdims=True)
        p = jnp.exp(s - m)                        # unnormalized probs
        l = jnp.sum(p, axis=-1, keepdims=True)
        o = jnp.dot(p.astype(bf16), vh, preferred_element_type=f32)
        o_all_ref[:, sl] = o * pl.reciprocal(l, approx=False)  # deferred norm

    # ONE full-width output projection (contraction K = D, not K = dh).
    attn = (jnp.dot(o_all_ref[...].astype(bf16), wo_ref[...],
                    preferred_element_type=f32) + bo_ref[...])
    # TODO(synk): fully-masked query rows produce a uniform softmax (same as
    # the additive-bias reference behaviour); zero them if they can occur.

    seq_q1 = seq_q + gate_msa * attn

    # ---- gated GLU MLP branch (fori_loop over hidden-dim chunks) ------------
    xm = _rms_norm(seq_q1, n2_w_ref[...]) * (1.0 + scale_mlp) + shift_mlp
    xm_b = xm.astype(bf16)

    def mlp_chunk(c, acc):
        h1 = jnp.dot(xm_b, w1_ref[c], preferred_element_type=f32)   # (tq, hc)
        h2 = jnp.dot(xm_b, w2_ref[c], preferred_element_type=f32)   # (tq, hc)
        gated = (_silu(h1) * h2).astype(bf16)
        return acc + jnp.dot(gated, wout_ref[c], preferred_element_type=f32)

    # TODO(synk): on v7x, stream w1/w2/wout chunks from HBM (emit_pipeline or
    # an extra "arbitrary" grid axis) instead of holding all chunks resident.
    mlp = jax.lax.fori_loop(0, C, mlp_chunk, jnp.zeros((tq, D), f32))

    out_ref[0] = (seq_q1 + gate_mlp * mlp).astype(out_ref.dtype)


# ---------------------------------------------------------------------------
# Wrapper-side helpers.
# ---------------------------------------------------------------------------
def _num_mlp_chunks(hidden_dim, max_chunk=2048):
    nc = max(1, -(-hidden_dim // max_chunk))
    while hidden_dim % nc:
        nc += 1
    return nc


def _pick_q_tile(lq, max_tile=512):
    """Largest divisor of Lq that is <= max_tile and a multiple of 8."""
    if lq <= max_tile:
        return lq
    for t in range(max_tile, 7, -1):
        if lq % t == 0 and t % 8 == 0:
            return t
    return lq


def _vmem_limit_bytes():
    """Generation-aware VMEM budget: headroom on v7x (64 MiB/TC physical),
    larger budget on v5e/v6e (128 MiB physical)."""
    default = 64 * 1024 * 1024
    try:
        info = pltpu.get_tpu_info()
    except Exception:
        return default
    cap = None
    for name in ("vmem_capacity_bytes", "vmem_size_bytes", "vmem_bytes"):
        cap = getattr(info, name, None)
        if cap:
            break
    if not cap:
        return default
    if cap <= 64 * 1024 * 1024:       # v7x-class: leave scratch headroom
        return 52 * 1024 * 1024
    return 100 * 1024 * 1024          # v5e/v6e


def _const_spec(arr):
    """Full-array weight block with a constant index map, single-buffered:
    the block never changes across the grid, so double buffering only
    doubles the weight VMEM footprint."""
    nd = arr.ndim
    return pl.BlockSpec(arr.shape, lambda b, q: (0,) * nd,
                        pipeline_mode=pl.Buffered(1))


def prepare_ca_layer_weights(params, num_heads, max_mlp_chunk=2048):
    """One-time weight preparation (casts / chunking / scale folding).
    Call once and reuse across forward steps - NOT in the per-step path."""
    f32, bf16 = jnp.float32, jnp.bfloat16
    D = params["wq"].shape[0]
    dh = D // num_heads
    Hm = params["wout"].shape[0]
    C = _num_mlp_chunks(Hm, max_mlp_chunk)
    hc = Hm // C
    scale = 1.0 / (dh ** 0.5)

    win = params["win"].astype(f32)
    w1 = win[:, :Hm].reshape(D, C, hc).transpose(1, 0, 2)     # x1 half -> SiLU
    w2 = win[:, Hm:].reshape(D, C, hc).transpose(1, 0, 2)     # x2 half -> gate
    wout = params["wout"].astype(f32).reshape(C, hc, D)

    weights = [
        params["n1_w"].astype(f32),
        params["nk_w"].astype(f32),
        params["n2_w"].astype(f32),
        (params["wq"] * scale).astype(bf16),
        (params["bq"] * scale).astype(f32),
        params["wk"].astype(bf16),
        params["bk"].astype(f32),
        params["wv"].astype(bf16),
        params["bv"].astype(f32),
        params["wo"].astype(bf16),
        params["bo"].astype(f32),
        w1.astype(bf16),
        w2.astype(bf16),
        wout.astype(bf16),
    ]
    return {
        "ada_w": params["ada_w"].astype(f32),   # (3D, 6D): used wrapper-side
        "ada_b": params["ada_b"].astype(f32),   # (1, 6D)
        "weights": weights,
        "num_heads": num_heads,
    }


# ---------------------------------------------------------------------------
# One fused pallas_call per CALayer, grid over (batch, query tiles).
# ---------------------------------------------------------------------------
def ca_layer(seq_q, seq_k, ctxt, mask_k, prepared):
    B, Lq, D = seq_q.shape
    Lk = seq_k.shape[1]
    weights = prepared["weights"]
    num_heads = prepared["num_heads"]

    # adaLN modulation out of the kernel: one tiny batched XLA matmul.
    # Chunk order matches torch .chunk(6, dim=-1):
    # shift_msa, scale_msa, gate_msa, shift_mlp, scale_mlp, gate_mlp.
    mods = (jax.nn.silu(ctxt.astype(jnp.float32)) @ prepared["ada_w"]
            + prepared["ada_b"]).reshape(B, 6, D)

    mask = mask_k.astype(jnp.float32).reshape(B, 1, Lk)
    bias = jnp.where(mask > 0.5, 0.0, -1e30).astype(jnp.float32)

    tq = _pick_q_tile(Lq)
    grid = (B, Lq // tq)

    in_specs = [
        pl.BlockSpec((1, tq, D), lambda b, q: (b, q, 0)),      # seq_q tile
        pl.BlockSpec((1, Lk, D), lambda b, q: (b, 0, 0)),      # seq_k (full)
        pl.BlockSpec((1, 6, D), lambda b, q: (b, 0, 0)),       # adaLN chunks
        pl.BlockSpec((1, 1, Lk), lambda b, q: (b, 0, 0)),      # key-mask bias
    ] + [_const_spec(w) for w in weights]

    kernel = functools.partial(ca_layer_kernel, num_heads=num_heads)

    return pl.pallas_call(
        kernel,
        out_shape=jax.ShapeDtypeStruct((B, Lq, D), seq_q.dtype),
        grid=grid,
        in_specs=in_specs,
        out_specs=pl.BlockSpec((1, tq, D), lambda b, q: (b, q, 0)),
        scratch_shapes=[pltpu.VMEM((tq, D), jnp.float32)],
        compiler_params=pltpu.CompilerParams(
            dimension_semantics=("parallel", "parallel"),
            vmem_limit_bytes=_vmem_limit_bytes(),
        ),
    )(seq_q, seq_k, mods, bias, *weights)


def ca_block(seq_a, seq_b, ctxt, prepared_a, prepared_b,
             is_last=False, mask_a=None, mask_b=None):
    """CABlock.forward: layer_b(seq_b <- seq_a), then (if not last) layer_a."""
    B, La, _ = seq_a.shape
    Lb = seq_b.shape[1]
    if mask_a is None:
        mask_a = jnp.ones((B, La), jnp.float32)
    if mask_b is None:
        mask_b = jnp.ones((B, Lb), jnp.float32)

    seq_b = ca_layer(seq_b, seq_a, ctxt, mask_a, prepared_b)
    if not is_last:
        seq_a = ca_layer(seq_a, seq_b, ctxt, mask_b, prepared_a)
    return seq_a, seq_b


# ---------------------------------------------------------------------------
# Deterministic synthetic parameter init (shapes match the PyTorch __init__).
# ---------------------------------------------------------------------------
def init_ca_layer_params(key, hidden_dim, mlp_ratio=4.0):
    D = hidden_dim
    Hm = int(D * mlp_ratio)
    ks = jax.random.split(key, 16)

    def lin(k, fan_in, shape):
        return jax.random.normal(k, shape, jnp.float32) / jnp.sqrt(fan_in)

    return {
        # adaLN_modulation: Linear(3D -> 6D), with bias
        "ada_w": lin(ks[0], 3 * D, (3 * D, 6 * D)),
        "ada_b": 0.01 * jax.random.normal(ks[1], (1, 6 * D), jnp.float32),
        # RMSNorm scales
        "n1_w": 1.0 + 0.01 * jax.random.normal(ks[2], (1, D), jnp.float32),
        "nk_w": 1.0 + 0.01 * jax.random.normal(ks[3], (1, D), jnp.float32),
        "n2_w": 1.0 + 0.01 * jax.random.normal(ks[4], (1, D), jnp.float32),
        # attention projections
        "wq": lin(ks[5], D, (D, D)),
        "bq": 0.01 * jax.random.normal(ks[6], (1, D), jnp.float32),
        "wk": lin(ks[7], D, (D, D)),
        "bk": 0.01 * jax.random.normal(ks[8], (1, D), jnp.float32),
        "wv": lin(ks[9], D, (D, D)),
        "bv": 0.01 * jax.random.normal(ks[10], (1, D), jnp.float32),
        "wo": lin(ks[11], D, (D, D)),
        "bo": 0.01 * jax.random.normal(ks[12], (1, D), jnp.float32),
        # GLU (gated=True, bias=False): in_proj D -> 2*Hm, out_proj Hm -> D
        "win": lin(ks[13], D, (D, 2 * Hm)),
        "wout": lin(ks[14], Hm, (Hm, D)),
    }


if __name__ == "__main__":
    B = 2
    D = 32          # hidden_dim
    NH = 4          # num_heads
    LA = 8          # seq_a length
    LB = 16         # seq_b length

    key = jax.random.PRNGKey(0)
    k_a, k_b, k_sa, k_sb, k_c = jax.random.split(key, 5)

    params_a = init_ca_layer_params(k_a, D)
    params_b = init_ca_layer_params(k_b, D)

    # Weight preparation done ONCE, outside the per-step call path.
    prepared_a = prepare_ca_layer_weights(params_a, NH)
    prepared_b = prepare_ca_layer_weights(params_b, NH)

    seq_a = jax.random.normal(k_sa, (B, LA, D), jnp.float32)
    seq_b = jax.random.normal(k_sb, (B, LB, D), jnp.float32)
    ctxt = jax.random.normal(k_c, (B, 3 * D), jnp.float32)
    mask_a = jnp.ones((B, LA), jnp.float32)
    mask_b = jnp.ones((B, LB), jnp.float32)

    out_a, out_b = ca_block(seq_a, seq_b, ctxt, prepared_a, prepared_b,
                            is_last=False, mask_a=mask_a, mask_b=mask_b)
    jax.block_until_ready((out_a, out_b))
    assert out_a.shape == (B, LA, D) and out_b.shape == (B, LB, D)
    assert bool(jnp.all(jnp.isfinite(out_a))) and bool(jnp.all(jnp.isfinite(out_b)))
    print("KERNEL_OK")
</pallas_src>

<mosaic_0001>
module attributes {stable_mosaic.version = 11 : i64} {
  func.func @ca_layer_kernel(%arg0: i32, %arg1: i32, %arg2: memref<1x16x32xf32, #tpu.memory_space<vmem>>, %arg3: memref<1x8x32xf32, #tpu.memory_space<vmem>>, %arg4: memref<1x6x32xf32, #tpu.memory_space<vmem>>, %arg5: memref<1x1x8xf32, #tpu.memory_space<vmem>>, %arg6: memref<1x32xf32, #tpu.memory_space<vmem>>, %arg7: memref<1x32xf32, #tpu.memory_space<vmem>>, %arg8: memref<1x32xf32, #tpu.memory_space<vmem>>, %arg9: memref<32x32xbf16, #tpu.memory_space<vmem>>, %arg10: memref<1x32xf32, #tpu.memory_space<vmem>>, %arg11: memref<32x32xbf16, #tpu.memory_space<vmem>>, %arg12: memref<1x32xf32, #tpu.memory_space<vmem>>, %arg13: memref<32x32xbf16, #tpu.memory_space<vmem>>, %arg14: memref<1x32xf32, #tpu.memory_space<vmem>>, %arg15: memref<32x32xbf16, #tpu.memory_space<vmem>>, %arg16: memref<1x32xf32, #tpu.memory_space<vmem>>, %arg17: memref<1x32x128xbf16, #tpu.memory_space<vmem>>, %arg18: memref<1x32x128xbf16, #tpu.memory_space<vmem>>, %arg19: memref<1x128x32xbf16, #tpu.memory_space<vmem>>, %arg20: memref<1x16x32xf32, #tpu.memory_space<vmem>>, %arg21: memref<16x32xf32, #tpu.memory_space<vmem>>) attributes {dimension_semantics = [#tpu.dimension_semantics<parallel>, #tpu.dimension_semantics<parallel>], iteration_bounds = array<i64: 2, 1>, scalar_prefetch = 0 : i64, scratch_operands = 1 : i64, tpu.core_type = #tpu.core_type<tc>, window_params = [{transform_indices = @transform_0, window_bounds = array<i64: 1, 16, 32>}, {transform_indices = @transform_1, window_bounds = array<i64: 1, 8, 32>}, {transform_indices = @transform_2, window_bounds = array<i64: 1, 6, 32>}, {transform_indices = @transform_3, window_bounds = array<i64: 1, 1, 8>}, {pipeline_mode = #tpu.pipeline_mode<synchronous>, transform_indices = @transform_4, window_bounds = array<i64: 1, 32>}, {pipeline_mode = #tpu.pipeline_mode<synchronous>, transform_indices = @transform_5, window_bounds = array<i64: 1, 32>}, {pipeline_mode = #tpu.pipeline_mode<synchronous>, transform_indices = @transform_6, window_bounds = array<i64: 1, 32>}, {pipeline_mode = #tpu.pipeline_mode<synchronous>, transform_indices = @transform_7, window_bounds = array<i64: 32, 32>}, {pipeline_mode = #tpu.pipeline_mode<synchronous>, transform_indices = @transform_8, window_bounds = array<i64: 1, 32>}, {pipeline_mode = #tpu.pipeline_mode<synchronous>, transform_indices = @transform_9, window_bounds = array<i64: 32, 32>}, {pipeline_mode = #tpu.pipeline_mode<synchronous>, transform_indices = @transform_10, window_bounds = array<i64: 1, 32>}, {pipeline_mode = #tpu.pipeline_mode<synchronous>, transform_indices = @transform_11, window_bounds = array<i64: 32, 32>}, {pipeline_mode = #tpu.pipeline_mode<synchronous>, transform_indices = @transform_12, window_bounds = array<i64: 1, 32>}, {pipeline_mode = #tpu.pipeline_mode<synchronous>, transform_indices = @transform_13, window_bounds = array<i64: 32, 32>}, {pipeline_mode = #tpu.pipeline_mode<synchronous>, transform_indices = @transform_14, window_bounds = array<i64: 1, 32>}, {pipeline_mode = #tpu.pipeline_mode<synchronous>, transform_indices = @transform_15, window_bounds = array<i64: 1, 32, 128>}, {pipeline_mode = #tpu.pipeline_mode<synchronous>, transform_indices = @transform_16, window_bounds = array<i64: 1, 32, 128>}, {pipeline_mode = #tpu.pipeline_mode<synchronous>, transform_indices = @transform_17, window_bounds = array<i64: 1, 128, 32>}, {transform_indices = @transform_18, window_bounds = array<i64: 1, 16, 32>}]} {
    %c0 = arith.constant 0 : index
    %c0_0 = arith.constant 0 : index
    %c0_1 = arith.constant 0 : index
    %0 = vector.load %arg2[%c0, %c0_0, %c0_1] : memref<1x16x32xf32, #tpu.memory_space<vmem>>, vector<1x16x32xf32>
    %1 = vector.shape_cast %0 : vector<1x16x32xf32> to vector<16x32xf32>
    %c0_2 = arith.constant 0 : index
    %c0_3 = arith.constant 0 : index
    %c0_4 = arith.constant 0 : index
    %2 = vector.load %arg3[%c0_2, %c0_3, %c0_4] : memref<1x8x32xf32, #tpu.memory_space<vmem>>, vector<1x8x32xf32>
    %3 = vector.shape_cast %2 : vector<1x8x32xf32> to vector<8x32xf32>
    %c0_5 = arith.constant 0 : index
    %c0_6 = arith.constant 0 : index
    %c0_7 = arith.constant 0 : index
    %4 = vector.load %arg4[%c0_5, %c0_6, %c0_7] : memref<1x6x32xf32, #tpu.memory_space<vmem>>, vector<1x6x32xf32>
    %5 = vector.shape_cast %4 : vector<1x6x32xf32> to vector<6x32xf32>
    %6 = vector.extract_strided_slice %5 {offsets = [0, 0], sizes = [1, 32], strides = [1, 1]} : vector<6x32xf32> to vector<1x32xf32>
    %7 = vector.extract_strided_slice %5 {offsets = [1, 0], sizes = [1, 32], strides = [1, 1]} : vector<6x32xf32> to vector<1x32xf32>
    %8 = vector.extract_strided_slice %5 {offsets = [2, 0], sizes = [1, 32], strides = [1, 1]} : vector<6x32xf32> to vector<1x32xf32>
    %9 = vector.extract_strided_slice %5 {offsets = [3, 0], sizes = [1, 32], strides = [1, 1]} : vector<6x32xf32> to vector<1x32xf32>
    %10 = vector.extract_strided_slice %5 {offsets = [4, 0], sizes = [1, 32], strides = [1, 1]} : vector<6x32xf32> to vector<1x32xf32>
    %11 = vector.extract_strided_slice %5 {offsets = [5, 0], sizes = [1, 32], strides = [1, 1]} : vector<6x32xf32> to vector<1x32xf32>
    %c0_8 = arith.constant 0 : index
    %c0_9 = arith.constant 0 : index
    %12 = vector.load %arg6[%c0_8, %c0_9] : memref<1x32xf32, #tpu.memory_space<vmem>>, vector<1x32xf32>
    %13 = arith.mulf %1, %1 : vector<16x32xf32>
    %cst = arith.constant dense<0.000000e+00> : vector<16xf32>
    %14 = vector.multi_reduction <add>, %13, %cst [1] : vector<16x32xf32> to vector<16xf32>
    %15 = vector.shape_cast %14 : vector<16xf32> to vector<16x1xf32>
    %cst_10 = arith.constant 3.200000e+01 : f32
    %16 = vector.broadcast %cst_10 : f32 to vector<16x1xf32>
    %17 = arith.divf %15, %16 : vector<16x1xf32>
    %cst_11 = arith.constant 9.99999997E-7 : f32
    %18 = vector.broadcast %cst_11 : f32 to vector<16x1xf32>
    %19 = arith.addf %17, %18 : vector<16x1xf32>
    %20 = math.rsqrt %19 : vector<16x1xf32>
    %21 = vector.broadcast %20 : vector<16x1xf32> to vector<16x32xf32>
    %22 = arith.mulf %1, %21 : vector<16x32xf32>
    %23 = vector.broadcast %12 : vector<1x32xf32> to vector<16x32xf32>
    %24 = arith.mulf %22, %23 : vector<16x32xf32>
    %cst_12 = arith.constant 1.000000e+00 : f32
    %25 = vector.broadcast %cst_12 : f32 to vector<1x32xf32>
    %26 = arith.addf %25, %7 : vector<1x32xf32>
    %27 = vector.broadcast %26 : vector<1x32xf32> to vector<16x32xf32>
    %28 = arith.mulf %24, %27 : vector<16x32xf32>
    %29 = vector.broadcast %6 : vector<1x32xf32> to vector<16x32xf32>
    %30 = arith.addf %28, %29 : vector<16x32xf32>
    %c0_13 = arith.constant 0 : index
    %c0_14 = arith.constant 0 : index
    %31 = vector.load %arg7[%c0_13, %c0_14] : memref<1x32xf32, #tpu.memory_space<vmem>>, vector<1x32xf32>
    %32 = arith.mulf %3, %3 : vector<8x32xf32>
    %cst_15 = arith.constant dense<0.000000e+00> : vector<8xf32>
    %33 = vector.multi_reduction <add>, %32, %cst_15 [1] : vector<8x32xf32> to vector<8xf32>
    %34 = vector.shape_cast %33 : vector<8xf32> to vector<8x1xf32>
    %cst_16 = arith.constant 3.200000e+01 : f32
    %35 = vector.broadcast %cst_16 : f32 to vector<8x1xf32>
    %36 = arith.divf %34, %35 : vector<8x1xf32>
    %cst_17 = arith.constant 9.99999997E-7 : f32
    %37 = vector.broadcast %cst_17 : f32 to vector<8x1xf32>
    %38 = arith.addf %36, %37 : vector<8x1xf32>
    %39 = math.rsqrt %38 : vector<8x1xf32>
    %40 = vector.broadcast %39 : vector<8x1xf32> to vector<8x32xf32>
    %41 = arith.mulf %3, %40 : vector<8x32xf32>
    %42 = vector.broadcast %31 : vector<1x32xf32> to vector<8x32xf32>
    %43 = arith.mulf %41, %42 : vector<8x32xf32>
    %44 = arith.truncf %30 : vector<16x32xf32> to vector<16x32xbf16>
    %45 = arith.truncf %43 : vector<8x32xf32> to vector<8x32xbf16>
    %c0_18 = arith.constant 0 : index
    %c0_19 = arith.constant 0 : index
    %46 = vector.load %arg9[%c0_18, %c0_19] : memref<32x32xbf16, #tpu.memory_space<vmem>>, vector<32x32xbf16>
    %cst_20 = arith.constant dense<0.000000e+00> : vector<16x32xf32>
    %47 = tpu.matmul %44, %46, %cst_20 {dimension_numbers = #tpu.dot_dimension_numbers<[1], [0], [0], [1], [0, 0, 1, 1], [], []>} : vector<16x32xbf16>, vector<32x32xbf16>, vector<16x32xf32> -> vector<16x32xf32>
    %c0_21 = arith.constant 0 : index
    %c0_22 = arith.constant 0 : index
    %48 = vector.load %arg10[%c0_21, %c0_22] : memref<1x32xf32, #tpu.memory_space<vmem>>, vector<1x32xf32>
    %49 = vector.broadcast %48 : vector<1x32xf32> to vector<16x32xf32>
    %50 = arith.addf %47, %49 : vector<16x32xf32>
    %51 = arith.truncf %50 : vector<16x32xf32> to vector<16x32xbf16>
    %c0_23 = arith.constant 0 : index
    %c0_24 = arith.constant 0 : index
    %52 = vector.load %arg11[%c0_23, %c0_24] : memref<32x32xbf16, #tpu.memory_space<vmem>>, vector<32x32xbf16>
    %cst_25 = arith.constant dense<0.000000e+00> : vector<8x32xf32>
    %53 = tpu.matmul %45, %52, %cst_25 {dimension_numbers = #tpu.dot_dimension_numbers<[1], [0], [0], [1], [0, 0, 1, 1], [], []>} : vector<8x32xbf16>, vector<32x32xbf16>, vector<8x32xf32> -> vector<8x32xf32>
    %c0_26 = arith.constant 0 : index
    %c0_27 = arith.constant 0 : index
    %54 = vector.load %arg12[%c0_26, %c0_27] : memref<1x32xf32, #tpu.memory_space<vmem>>, vector<1x32xf32>
    %55 = vector.broadcast %54 : vector<1x32xf32> to vector<8x32xf32>
    %56 = arith.addf %53, %55 : vector<8x32xf32>
    %57 = arith.truncf %56 : vector<8x32xf32> to vector<8x32xbf16>
    %c0_28 = arith.constant 0 : index
    %c0_29 = arith.constant 0 : index
    %58 = vector.load %arg13[%c0_28, %c0_29] : memref<32x32xbf16, #tpu.memory_space<vmem>>, vector<32x32xbf16>
    %cst_30 = arith.constant dense<0.000000e+00> : vector<8x32xf32>
    %59 = tpu.matmul %45, %58, %cst_30 {dimension_numbers = #tpu.dot_dimension_numbers<[1], [0], [0], [1], [0, 0, 1, 1], [], []>} : vector<8x32xbf16>, vector<32x32xbf16>, vector<8x32xf32> -> vector<8x32xf32>
    %c0_31 = arith.constant 0 : index
    %c0_32 = arith.constant 0 : index
    %60 = vector.load %arg14[%c0_31, %c0_32] : memref<1x32xf32, #tpu.memory_space<vmem>>, vector<1x32xf32>
    %61 = vector.broadcast %60 : vector<1x32xf32> to vector<8x32xf32>
    %62 = arith.addf %59, %61 : vector<8x32xf32>
    %63 = arith.truncf %62 : vector<8x32xf32> to vector<8x32xbf16>
    %c0_33 = arith.constant 0 : index
    %c0_34 = arith.constant 0 : index
    %c0_35 = arith.constant 0 : index
    %64 = vector.load %arg5[%c0_33, %c0_34, %c0_35] : memref<1x1x8xf32, #tpu.memory_space<vmem>>, vector<1x1x8xf32>
    %65 = vector.shape_cast %64 : vector<1x1x8xf32> to vector<1x8xf32>
    %66 = vector.shape_cast %65 : vector<1x8xf32> to vector<1x8xf32>
    %67 = vector.broadcast %66 : vector<1x8xf32> to vector<16x8xf32>
    %68 = vector.extract_strided_slice %51 {offsets = [0, 0], sizes = [16, 8], strides = [1, 1]} : vector<16x32xbf16> to vector<16x8xbf16>
    %69 = vector.extract_strided_slice %57 {offsets = [0, 0], sizes = [8, 8], strides = [1, 1]} : vector<8x32xbf16> to vector<8x8xbf16>
    %70 = vector.extract_strided_slice %63 {offsets = [0, 0], sizes = [8, 8], strides = [1, 1]} : vector<8x32xbf16> to vector<8x8xbf16>
    %cst_36 = arith.constant dense<0.000000e+00> : vector<16x8xf32>
    %71 = tpu.matmul %68, %69, %cst_36 {dimension_numbers = #tpu.dot_dimension_numbers<[1], [1], [0], [0], [0, 0, 1, 0], [], []>} : vector<16x8xbf16>, vector<8x8xbf16>, vector<16x8xf32> -> vector<16x8xf32>
    %72 = arith.addf %71, %67 : vector<16x8xf32>
    %cst_37 = arith.constant dense<0xFF800000> : vector<16xf32>
    %73 = vector.multi_reduction <maximumf>, %72, %cst_37 [1] : vector<16x8xf32> to vector<16xf32>
    %74 = vector.shape_cast %73 : vector<16xf32> to vector<16x1xf32>
    %75 = vector.broadcast %74 : vector<16x1xf32> to vector<16x8xf32>
    %76 = arith.subf %72, %75 : vector<16x8xf32>
    %77 = math.exp %76 : vector<16x8xf32>
    %cst_38 = arith.constant dense<0.000000e+00> : vector<16xf32>
    %78 = vector.multi_reduction <add>, %77, %cst_38 [1] : vector<16x8xf32> to vector<16xf32>
    %79 = vector.shape_cast %78 : vector<16xf32> to vector<16x1xf32>
    %80 = arith.truncf %77 : vector<16x8xf32> to vector<16x8xbf16>
    %cst_39 = arith.constant dense<0.000000e+00> : vector<16x8xf32>
    %81 = tpu.matmul %80, %70, %cst_39 {dimension_numbers = #tpu.dot_dimension_numbers<[1], [0], [0], [1], [0, 0, 1, 1], [], []>} : vector<16x8xbf16>, vector<8x8xbf16>, vector<16x8xf32> -> vector<16x8xf32>
    %82 = tpu.reciprocal %79 : vector<16x1xf32> -> vector<16x1xf32>
    %83 = vector.broadcast %82 : vector<16x1xf32> to vector<16x8xf32>
    %84 = arith.mulf %81, %83 : vector<16x8xf32>
    %c0_40 = arith.constant 0 : index
    %c0_41 = arith.constant 0 : index
    %85 = vector.load %arg21[%c0_40, %c0_41] : memref<16x32xf32, #tpu.memory_space<vmem>>, vector<16x8xf32>
    tpu.vector_store %arg21[%c0_40, %c0_41], %84 {strides = array<i32>} : memref<16x32xf32, #tpu.memory_space<vmem>>, vector<16x8xf32>,
    %86 = vector.extract_strided_slice %51 {offsets = [0, 8], sizes = [16, 8], strides = [1, 1]} : vector<16x32xbf16> to vector<16x8xbf16>
    %87 = vector.extract_strided_slice %57 {offsets = [0, 8], sizes = [8, 8], strides = [1, 1]} : vector<8x32xbf16> to vector<8x8xbf16>
    %88 = vector.extract_strided_slice %63 {offsets = [0, 8], sizes = [8, 8], strides = [1, 1]} : vector<8x32xbf16> to vector<8x8xbf16>
    %cst_42 = arith.constant dense<0.000000e+00> : vector<16x8xf32>
    %89 = tpu.matmul %86, %87, %cst_42 {dimension_numbers = #tpu.dot_dimension_numbers<[1], [1], [0], [0], [0, 0, 1, 0], [], []>} : vector<16x8xbf16>, vector<8x8xbf16>, vector<16x8xf32> -> vector<16x8xf32>
    %90 = arith.addf %89, %67 : vector<16x8xf32>
    %cst_43 = arith.constant dense<0xFF800000> : vector<16xf32>
    %91 = vector.multi_reduction <maximumf>, %90, %cst_43 [1] : vector<16x8xf32> to vector<16xf32>
    %92 = vector.shape_cast %91 : vector<16xf32> to vector<16x1xf32>
    %93 = vector.broadcast %92 : vector<16x1xf32> to vector<16x8xf32>
    %94 = arith.subf %90, %93 : vector<16x8xf32>
    %95 = math.exp %94 : vector<16x8xf32>
    %cst_44 = arith.constant dense<0.000000e+00> : vector<16xf32>
    %96 = vector.multi_reduction <add>, %95, %cst_44 [1] : vector<16x8xf32> to vector<16xf32>
    %97 = vector.shape_cast %96 : vector<16xf32> to vector<16x1xf32>
    %98 = arith.truncf %95 : vector<16x8xf32> to vector<16x8xbf16>
    %cst_45 = arith.constant dense<0.000000e+00> : vector<16x8xf32>
    %99 = tpu.matmul %98, %88, %cst_45 {dimension_numbers = #tpu.dot_dimension_numbers<[1], [0], [0], [1], [0, 0, 1, 1], [], []>} : vector<16x8xbf16>, vector<8x8xbf16>, vector<16x8xf32> -> vector<16x8xf32>
    %100 = tpu.reciprocal %97 : vector<16x1xf32> -> vector<16x1xf32>
    %101 = vector.broadcast %100 : vector<16x1xf32> to vector<16x8xf32>
    %102 = arith.mulf %99, %101 : vector<16x8xf32>
    %c0_46 = arith.constant 0 : index
    %c8 = arith.constant 8 : index
    %103 = vector.load %arg21[%c0_46, %c8] : memref<16x32xf32, #tpu.memory_space<vmem>>, vector<16x8xf32>
    tpu.vector_store %arg21[%c0_46, %c8], %102 {strides = array<i32>} : memref<16x32xf32, #tpu.memory_space<vmem>>, vector<16x8xf32>,
    %104 = vector.extract_strided_slice %51 {offsets = [0, 16], sizes = [16, 8], strides = [1, 1]} : vector<16x32xbf16> to vector<16x8xbf16>
    %105 = vector.extract_strided_slice %57 {offsets = [0, 16], sizes = [8, 8], strides = [1, 1]} : vector<8x32xbf16> to vector<8x8xbf16>
    %106 = vector.extract_strided_slice %63 {offsets = [0, 16], sizes = [8, 8], strides = [1, 1]} : vector<8x32xbf16> to vector<8x8xbf16>
    %cst_47 = arith.constant dense<0.000000e+00> : vector<16x8xf32>
    %107 = tpu.matmul %104, %105, %cst_47 {dimension_numbers = #tpu.dot_dimension_numbers<[1], [1], [0], [0], [0, 0, 1, 0], [], []>} : vector<16x8xbf16>, vector<8x8xbf16>, vector<16x8xf32> -> vector<16x8xf32>
    %108 = arith.addf %107, %67 : vector<16x8xf32>
    %cst_48 = arith.constant dense<0xFF800000> : vector<16xf32>
    %109 = vector.multi_reduction <maximumf>, %108, %cst_48 [1] : vector<16x8xf32> to vector<16xf32>
    %110 = vector.shape_cast %109 : vector<16xf32> to vector<16x1xf32>
    %111 = vector.broadcast %110 : vector<16x1xf32> to vector<16x8xf32>
    %112 = arith.subf %108, %111 : vector<16x8xf32>
    %113 = math.exp %112 : vector<16x8xf32>
    %cst_49 = arith.constant dense<0.000000e+00> : vector<16xf32>
    %114 = vector.multi_reduction <add>, %113, %cst_49 [1] : vector<16x8xf32> to vector<16xf32>
    %115 = vector.shape_cast %114 : vector<16xf32> to vector<16x1xf32>
    %116 = arith.truncf %113 : vector<16x8xf32> to vector<16x8xbf16>
    %cst_50 = arith.constant dense<0.000000e+00> : vector<16x8xf32>
    %117 = tpu.matmul %116, %106, %cst_50 {dimension_numbers = #tpu.dot_dimension_numbers<[1], [0], [0], [1], [0, 0, 1, 1], [], []>} : vector<16x8xbf16>, vector<8x8xbf16>, vector<16x8xf32> -> vector<16x8xf32>
    %118 = tpu.reciprocal %115 : vector<16x1xf32> -> vector<16x1xf32>
    %119 = vector.broadcast %118 : vector<16x1xf32> to vector<16x8xf32>
    %120 = arith.mulf %117, %119 : vector<16x8xf32>
    %c0_51 = arith.constant 0 : index
    %c16 = arith.constant 16 : index
    %121 = vector.load %arg21[%c0_51, %c16] : memref<16x32xf32, #tpu.memory_space<vmem>>, vector<16x8xf32>
    tpu.vector_store %arg21[%c0_51, %c16], %120 {strides = array<i32>} : memref<16x32xf32, #tpu.memory_space<vmem>>, vector<16x8xf32>,
    %122 = vector.extract_strided_slice %51 {offsets = [0, 24], sizes = [16, 8], strides = [1, 1]} : vector<16x32xbf16> to vector<16x8xbf16>
    %123 = vector.extract_strided_slice %57 {offsets = [0, 24], sizes = [8, 8], strides = [1, 1]} : vector<8x32xbf16> to vector<8x8xbf16>
    %124 = vector.extract_strided_slice %63 {offsets = [0, 24], sizes = [8, 8], strides = [1, 1]} : vector<8x32xbf16> to vector<8x8xbf16>
    %cst_52 = arith.constant dense<0.000000e+00> : vector<16x8xf32>
    %125 = tpu.matmul %122, %123, %cst_52 {dimension_numbers = #tpu.dot_dimension_numbers<[1], [1], [0], [0], [0, 0, 1, 0], [], []>} : vector<16x8xbf16>, vector<8x8xbf16>, vector<16x8xf32> -> vector<16x8xf32>
    %126 = arith.addf %125, %67 : vector<16x8xf32>
    %cst_53 = arith.constant dense<0xFF800000> : vector<16xf32>
    %127 = vector.multi_reduction <maximumf>, %126, %cst_53 [1] : vector<16x8xf32> to vector<16xf32>
    %128 = vector.shape_cast %127 : vector<16xf32> to vector<16x1xf32>
    %129 = vector.broadcast %128 : vector<16x1xf32> to vector<16x8xf32>
    %130 = arith.subf %126, %129 : vector<16x8xf32>
    %131 = math.exp %130 : vector<16x8xf32>
    %cst_54 = arith.constant dense<0.000000e+00> : vector<16xf32>
    %132 = vector.multi_reduction <add>, %131, %cst_54 [1] : vector<16x8xf32> to vector<16xf32>
    %133 = vector.shape_cast %132 : vector<16xf32> to vector<16x1xf32>
    %134 = arith.truncf %131 : vector<16x8xf32> to vector<16x8xbf16>
    %cst_55 = arith.constant dense<0.000000e+00> : vector<16x8xf32>
    %135 = tpu.matmul %134, %124, %cst_55 {dimension_numbers = #tpu.dot_dimension_numbers<[1], [0], [0], [1], [0, 0, 1, 1], [], []>} : vector<16x8xbf16>, vector<8x8xbf16>, vector<16x8xf32> -> vector<16x8xf32>
    %136 = tpu.reciprocal %133 : vector<16x1xf32> -> vector<16x1xf32>
    %137 = vector.broadcast %136 : vector<16x1xf32> to vector<16x8xf32>
    %138 = arith.mulf %135, %137 : vector<16x8xf32>
    %c0_56 = arith.constant 0 : index
    %c24 = arith.constant 24 : index
    %139 = vector.load %arg21[%c0_56, %c24] : memref<16x32xf32, #tpu.memory_space<vmem>>, vector<16x8xf32>
    tpu.vector_store %arg21[%c0_56, %c24], %138 {strides = array<i32>} : memref<16x32xf32, #tpu.memory_space<vmem>>, vector<16x8xf32>,
    %c0_57 = arith.constant 0 : index
    %c0_58 = arith.constant 0 : index
    %140 = vector.load %arg21[%c0_57, %c0_58] : memref<16x32xf32, #tpu.memory_space<vmem>>, vector<16x32xf32>
    %141 = arith.truncf %140 : vector<16x32xf32> to vector<16x32xbf16>
    %c0_59 = arith.constant 0 : index
    %c0_60 = arith.constant 0 : index
    %142 = vector.load %arg15[%c0_59, %c0_60] : memref<32x32xbf16, #tpu.memory_space<vmem>>, vector<32x32xbf16>
    %cst_61 = arith.constant dense<0.000000e+00> : vector<16x32xf32>
    %143 = tpu.matmul %141, %142, %cst_61 {dimension_numbers = #tpu.dot_dimension_numbers<[1], [0], [0], [1], [0, 0, 1, 1], [], []>} : vector<16x32xbf16>, vector<32x32xbf16>, vector<16x32xf32> -> vector<16x32xf32>
    %c0_62 = arith.constant 0 : index
    %c0_63 = arith.constant 0 : index
    %144 = vector.load %arg16[%c0_62, %c0_63] : memref<1x32xf32, #tpu.memory_space<vmem>>, vector<1x32xf32>
    %145 = vector.broadcast %144 : vector<1x32xf32> to vector<16x32xf32>
    %146 = arith.addf %143, %145 : vector<16x32xf32>
    %147 = vector.broadcast %8 : vector<1x32xf32> to vector<16x32xf32>
    %148 = arith.mulf %147, %146 : vector<16x32xf32>
    %149 = arith.addf %1, %148 : vector<16x32xf32>
    %c0_64 = arith.constant 0 : index
    %c0_65 = arith.constant 0 : index
    %150 = vector.load %arg8[%c0_64, %c0_65] : memref<1x32xf32, #tpu.memory_space<vmem>>, vector<1x32xf32>
    %151 = arith.mulf %149, %149 : vector<16x32xf32>
    %cst_66 = arith.constant dense<0.000000e+00> : vector<16xf32>
    %152 = vector.multi_reduction <add>, %151, %cst_66 [1] : vector<16x32xf32> to vector<16xf32>
    %153 = vector.shape_cast %152 : vector<16xf32> to vector<16x1xf32>
    %cst_67 = arith.constant 3.200000e+01 : f32
    %154 = vector.broadcast %cst_67 : f32 to vector<16x1xf32>
    %155 = arith.divf %153, %154 : vector<16x1xf32>
    %cst_68 = arith.constant 9.99999997E-7 : f32
    %156 = vector.broadcast %cst_68 : f32 to vector<16x1xf32>
    %157 = arith.addf %155, %156 : vector<16x1xf32>
    %158 = math.rsqrt %157 : vector<16x1xf32>
    %159 = vector.broadcast %158 : vector<16x1xf32> to vector<16x32xf32>
    %160 = arith.mulf %149, %159 : vector<16x32xf32>
    %161 = vector.broadcast %150 : vector<1x32xf32> to vector<16x32xf32>
    %162 = arith.mulf %160, %161 : vector<16x32xf32>
    %cst_69 = arith.constant 1.000000e+00 : f32
    %163 = vector.broadcast %cst_69 : f32 to vector<1x32xf32>
    %164 = arith.addf %163, %10 : vector<1x32xf32>
    %165 = vector.broadcast %164 : vector<1x32xf32> to vector<16x32xf32>
    %166 = arith.mulf %162, %165 : vector<16x32xf32>
    %167 = vector.broadcast %9 : vector<1x32xf32> to vector<16x32xf32>
    %168 = arith.addf %166, %167 : vector<16x32xf32>
    %169 = arith.truncf %168 : vector<16x32xf32> to vector<16x32xbf16>
    %cst_70 = arith.constant 0.000000e+00 : f32
    %170 = vector.broadcast %cst_70 : f32 to vector<16x32xf32>
    %c0_i32 = arith.constant 0 : i32
    %171 = arith.index_cast %c0_i32 : i32 to index
    %c0_71 = arith.constant 0 : index
    %c0_72 = arith.constant 0 : index
    %172 = vector.load %arg17[%171, %c0_71, %c0_72] : memref<1x32x128xbf16, #tpu.memory_space<vmem>>, vector<1x32x128xbf16>
    %173 = vector.shape_cast %172 : vector<1x32x128xbf16> to vector<32x128xbf16>
    %cst_73 = arith.constant dense<0.000000e+00> : vector<16x128xf32>
    %174 = tpu.matmul %169, %173, %cst_73 {dimension_numbers = #tpu.dot_dimension_numbers<[1], [0], [0], [1], [0, 0, 1, 1], [], []>} : vector<16x32xbf16>, vector<32x128xbf16>, vector<16x128xf32> -> vector<16x128xf32>
    %175 = arith.index_cast %c0_i32 : i32 to index
    %c0_74 = arith.constant 0 : index
    %c0_75 = arith.constant 0 : index
    %176 = vector.load %arg18[%175, %c0_74, %c0_75] : memref<1x32x128xbf16, #tpu.memory_space<vmem>>, vector<1x32x128xbf16>
    %177 = vector.shape_cast %176 : vector<1x32x128xbf16> to vector<32x128xbf16>
    %cst_76 = arith.constant dense<0.000000e+00> : vector<16x128xf32>
    %178 = tpu.matmul %169, %177, %cst_76 {dimension_numbers = #tpu.dot_dimension_numbers<[1], [0], [0], [1], [0, 0, 1, 1], [], []>} : vector<16x32xbf16>, vector<32x128xbf16>, vector<16x128xf32> -> vector<16x128xf32>
    %179 = arith.negf %174 : vector<16x128xf32>
    %180 = math.exp %179 : vector<16x128xf32>
    %cst_77 = arith.constant 1.000000e+00 : f32
    %181 = vector.broadcast %cst_77 : f32 to vector<16x128xf32>
    %182 = arith.addf %181, %180 : vector<16x128xf32>
    %183 = arith.divf %181, %182 : vector<16x128xf32>
    %184 = arith.mulf %174, %183 : vector<16x128xf32>
    %185 = arith.mulf %184, %178 : vector<16x128xf32>
    %186 = arith.truncf %185 : vector<16x128xf32> to vector<16x128xbf16>
    %187 = arith.index_cast %c0_i32 : i32 to index
    %c0_78 = arith.constant 0 : index
    %c0_79 = arith.constant 0 : index
    %188 = vector.load %arg19[%187, %c0_78, %c0_79] : memref<1x128x32xbf16, #tpu.memory_space<vmem>>, vector<1x128x32xbf16>
    %189 = vector.shape_cast %188 : vector<1x128x32xbf16> to vector<128x32xbf16>
    %cst_80 = arith.constant dense<0.000000e+00> : vector<16x32xf32>
    %190 = tpu.matmul %186, %189, %cst_80 {dimension_numbers = #tpu.dot_dimension_numbers<[1], [0], [0], [1], [0, 0, 1, 1], [], []>} : vector<16x128xbf16>, vector<128x32xbf16>, vector<16x32xf32> -> vector<16x32xf32>
    %191 = arith.addf %170, %190 : vector<16x32xf32>
    %c1_i32 = arith.constant 1 : i32
    %192 = vector.broadcast %11 : vector<1x32xf32> to vector<16x32xf32>
    %193 = arith.mulf %192, %191 : vector<16x32xf32>
    %194 = arith.addf %149, %193 : vector<16x32xf32>
    %c0_81 = arith.constant 0 : index
    %c0_82 = arith.constant 0 : index
    %c0_83 = arith.constant 0 : index
    %195 = vector.load %arg20[%c0_81, %c0_82, %c0_83] : memref<1x16x32xf32, #tpu.memory_space<vmem>>, vector<1x16x32xf32>
    %196 = vector.shape_cast %195 : vector<1x16x32xf32> to vector<16x32xf32>
    %197 = vector.shape_cast %194 : vector<16x32xf32> to vector<1x16x32xf32>
    tpu.vector_store %arg20[%c0_81, %c0_82, %c0_83], %197 {strides = array<i32>} : memref<1x16x32xf32, #tpu.memory_space<vmem>>, vector<1x16x32xf32>,
    return
  }
  func.func @transform_0(%arg0: i32, %arg1: i32) -> (i32, i32, i32) {
    %c0_i32 = arith.constant 0 : i32
    %c0_i32_0 = arith.constant 0 : i32
    return %arg0, %arg1, %c0_i32 : i32, i32, i32
  }
  func.func @transform_1(%arg0: i32, %arg1: i32) -> (i32, i32, i32) {
    %c0_i32 = arith.constant 0 : i32
    %c0_i32_0 = arith.constant 0 : i32
    %c0_i32_1 = arith.constant 0 : i32
    return %arg0, %c0_i32, %c0_i32_0 : i32, i32, i32
  }
  func.func @transform_2(%arg0: i32, %arg1: i32) -> (i32, i32, i32) {
    %c0_i32 = arith.constant 0 : i32
    %c0_i32_0 = arith.constant 0 : i32
    %c0_i32_1 = arith.constant 0 : i32
    return %arg0, %c0_i32, %c0_i32_0 : i32, i32, i32
  }
  func.func @transform_3(%arg0: i32, %arg1: i32) -> (i32, i32, i32) {
    %c0_i32 = arith.constant 0 : i32
    %c0_i32_0 = arith.constant 0 : i32
    %c0_i32_1 = arith.constant 0 : i32
    return %arg0, %c0_i32, %c0_i32_0 : i32, i32, i32
  }
  func.func @transform_4(%arg0: i32, %arg1: i32) -> (i32, i32) {
    %c0_i32 = arith.constant 0 : i32
    %c0_i32_0 = arith.constant 0 : i32
    %c0_i32_1 = arith.constant 0 : i32
    return %c0_i32, %c0_i32_0 : i32, i32
  }
  func.func @transform_5(%arg0: i32, %arg1: i32) -> (i32, i32) {
    %c0_i32 = arith.constant 0 : i32
    %c0_i32_0 = arith.constant 0 : i32
    %c0_i32_1 = arith.constant 0 : i32
    return %c0_i32, %c0_i32_0 : i32, i32
  }
  func.func @transform_6(%arg0: i32, %arg1: i32) -> (i32, i32) {
    %c0_i32 = arith.constant 0 : i32
    %c0_i32_0 = arith.constant 0 : i32
    %c0_i32_1 = arith.constant 0 : i32
    return %c0_i32, %c0_i32_0 : i32, i32
  }
  func.func @transform_7(%arg0: i32, %arg1: i32) -> (i32, i32) {
    %c0_i32 = arith.constant 0 : i32
    %c0_i32_0 = arith.constant 0 : i32
    %c0_i32_1 = arith.constant 0 : i32
    return %c0_i32, %c0_i32_0 : i32, i32
  }
  func.func @transform_8(%arg0: i32, %arg1: i32) -> (i32, i32) {
    %c0_i32 = arith.constant 0 : i32
    %c0_i32_0 = arith.constant 0 : i32
    %c0_i32_1 = arith.constant 0 : i32
    return %c0_i32, %c0_i32_0 : i32, i32
  }
  func.func @transform_9(%arg0: i32, %arg1: i32) -> (i32, i32) {
    %c0_i32 = arith.constant 0 : i32
    %c0_i32_0 = arith.constant 0 : i32
    %c0_i32_1 = arith.constant 0 : i32
    return %c0_i32, %c0_i32_0 : i32, i32
  }
  func.func @transform_10(%arg0: i32, %arg1: i32) -> (i32, i32) {
    %c0_i32 = arith.constant 0 : i32
    %c0_i32_0 = arith.constant 0 : i32
    %c0_i32_1 = arith.constant 0 : i32
    return %c0_i32, %c0_i32_0 : i32, i32
  }
  func.func @transform_11(%arg0: i32, %arg1: i32) -> (i32, i32) {
    %c0_i32 = arith.constant 0 : i32
    %c0_i32_0 = arith.constant 0 : i32
    %c0_i32_1 = arith.constant 0 : i32
    return %c0_i32, %c0_i32_0 : i32, i32
  }
  func.func @transform_12(%arg0: i32, %arg1: i32) -> (i32, i32) {
    %c0_i32 = arith.constant 0 : i32
    %c0_i32_0 = arith.constant 0 : i32
    %c0_i32_1 = arith.constant 0 : i32
    return %c0_i32, %c0_i32_0 : i32, i32
  }
  func.func @transform_13(%arg0: i32, %arg1: i32) -> (i32, i32) {
    %c0_i32 = arith.constant 0 : i32
    %c0_i32_0 = arith.constant 0 : i32
    %c0_i32_1 = arith.constant 0 : i32
    return %c0_i32, %c0_i32_0 : i32, i32
  }
  func.func @transform_14(%arg0: i32, %arg1: i32) -> (i32, i32) {
    %c0_i32 = arith.constant 0 : i32
    %c0_i32_0 = arith.constant 0 : i32
    %c0_i32_1 = arith.constant 0 : i32
    return %c0_i32, %c0_i32_0 : i32, i32
  }
  func.func @transform_15(%arg0: i32, %arg1: i32) -> (i32, i32, i32) {
    %c0_i32 = arith.constant 0 : i32
    %c0_i32_0 = arith.constant 0 : i32
    %c0_i32_1 = arith.constant 0 : i32
    %c0_i32_2 = arith.constant 0 : i32
    return %c0_i32, %c0_i32_0, %c0_i32_1 : i32, i32, i32
  }
  func.func @transform_16(%arg0: i32, %arg1: i32) -> (i32, i32, i32) {
    %c0_i32 = arith.constant 0 : i32
    %c0_i32_0 = arith.constant 0 : i32
    %c0_i32_1 = arith.constant 0 : i32
    %c0_i32_2 = arith.constant 0 : i32
    return %c0_i32, %c0_i32_0, %c0_i32_1 : i32, i32, i32
  }
  func.func @transform_17(%arg0: i32, %arg1: i32) -> (i32, i32, i32) {
    %c0_i32 = arith.constant 0 : i32
    %c0_i32_0 = arith.constant 0 : i32
    %c0_i32_1 = arith.constant 0 : i32
    %c0_i32_2 = arith.constant 0 : i32
    return %c0_i32, %c0_i32_0, %c0_i32_1 : i32, i32, i32
  }
  func.func @transform_18(%arg0: i32, %arg1: i32) -> (i32, i32, i32) {
    %c0_i32 = arith.constant 0 : i32
    %c0_i32_0 = arith.constant 0 : i32
    return %arg0, %arg1, %c0_i32 : i32, i32, i32
  }
}

</mosaic_0001>

<bundles_post_ra>
// kernel: tpu_custom_call.1
= control target key start
LH: loop header
LB: loop body
LE: loop exit
PB: predicated region body
PF: predicated region fallthrough
CT: control target
= control target key end

     0   :  { %s3030_s0 = inlined_call_operand.vmem [shape: f32[2,16,32], index: 0, kind: input, shape index: {}]   ;;  %s3031_s1 = inlined_call_operand.vmem [shape: f32[2,8,32], index: 1, kind: input, shape index: {}]   ;;  %s3032_s2 = inlined_call_operand.vmem [shape: f32[2,6,32], index: 2, kind: input, shape index: {}]   ;;  %s3033_s3 = inlined_call_operand.hbm [shape: f32[2,1,8], index: 3, kind: input, shape index: {}]   ;;  %s3034_s4 = inlined_call_operand.vmem [shape: f32[1,32], index: 4, kind: input, shape index: {}]   ;;  %s3035_s5 = inlined_call_operand.hbm [shape: f32[1,32], index: 5, kind: input, shape index: {}]   ;;  %s3036_s6 = inlined_call_operand.hbm [shape: f32[1,32], index: 6, kind: input, shape index: {}]   ;;  %s3037_s7 = inlined_call_operand.vmem [shape: bf16[32,32], index: 7, kind: input, shape index: {}]   ;;  %s3038_s8 = inlined_call_operand.vmem [shape: f32[1,32], index: 8, kind: input, shape index: {}]   ;;  %s3039_s9 = inlined_call_operand.vmem [shape: bf16[32,32], index: 9, kind: input, shape index: {}]   ;;  %s3040_s10 = inlined_call_operand.vmem [shape: f32[1,32], index: 10, kind: input, shape index: {}]   ;;  %s3041_s11 = inlined_call_operand.vmem [shape: bf16[32,32], index: 11, kind: input, shape index: {}]   ;;  %s3042_s12 = inlined_call_operand.vmem [shape: f32[1,32], index: 12, kind: input, shape index: {}]   ;;  %s3043_s13 = inlined_call_operand.hbm [shape: bf16[32,32], index: 13, kind: input, shape index: {}]   ;;  %s3044_s14 = inlined_call_operand.vmem [shape: f32[1,32], index: 14, kind: input, shape index: {}]   ;;  %s3045_s15 = inlined_call_operand.hbm [shape: bf16[1,32,128], index: 15, kind: input, shape index: {}]   ;;  %s3046_s16 = inlined_call_operand.hbm [shape: bf16[1,32,128], index: 16, kind: input, shape index: {}]   ;;  %s3047_s17 = inlined_call_operand.vmem [shape: bf16[1,128,32], index: 17, kind: input, shape index: {}]   ;;  %s3048_s18 = inlined_call_operand.hbm [shape: f32[2,16,32], index: 18, kind: output, shape index: {}]  }
   0x1   :  { %3053 = sst [smem:[#allocation20_spill]] %s3030_s0 }
   0x2   :  { %3054 = sst [smem:[#allocation21_spill]] %s3031_s1 }
   0x3   :  { %3055 = sst [smem:[#allocation22_spill]] %s3032_s2 }
   0x4   :  { %3056 = sst [smem:[#allocation23_spill]] %s3033_s3 }
   0x5   :  { %3057 = sst [smem:[#allocation24_spill]] %s3035_s5 }
   0x6   :  { %3058 = sst [smem:[#allocation25_spill]] %s3036_s6 }
   0x7   :  { %3059 = sst [smem:[#allocation26_spill]] %s3038_s8 }
   0x8   :  { %3060 = sst [smem:[#allocation27_spill]] %s3042_s12 }
   0x9   :  { %3061 = sst [smem:[#allocation28_spill]] %s3043_s13 }
   0xa   :  { %3062 = sst [smem:[#allocation29_spill]] %s3044_s14 }
   0xb   :  { %3063 = sst [smem:[#allocation30_spill]] %s3047_s17 }
   0xc   :  { %3064 = sst [smem:[#allocation31_spill]] %s3048_s18 }
   0xd   :  { %23 = vsyncpa [#allocation4], 0 }
   0xe   :  { %25 = vsyncpa [#allocation4 + $0x1], 0 }
   0xf   :  { %26 = vsyncpa [#allocation7], 0 }
  0x10   :  { %27 = vsyncpa [#allocation10], 0 }
  0x11   :  { %28 = vsyncpa [#allocation13], 0 }
  0x12   :  { %29 = vsyncpa [#allocation5], 0 }
  0x13   :  { %31 = vsyncpa [#allocation5 + $0x1], 0  ;;  %s2556_s27 = smov 0   ;;  %s2558_s28 = smov 0  }
  0x14   :  { %s2560_s29 = smov 0   ;;  %s2562_s30 = smov 0  }
  0x15   :  { %s2564_s0 = smov 0   ;;  %s2566_s19 = smov 0  }
  0x16 LB: > { %s3049_s1 = sadd.s32 4294967295, %s2444_s19   ;;  %p1846_p0 = scmp.ge.s32.totalorder %s2444_s19, 1  ;;  %s2444_s19 = sphi %s2566_s19, %s37_s19   ;;  %s2440_s0 = sphi %s2564_s0, %s3096_s0   ;;  %s2436_s30 = sphi %s2562_s30, %s3095_s30   ;;  %s2432_s29 = sphi %s2560_s29, %s3094_s29   ;;  %s2428_s28 = sphi %s2558_s28, %s3093_s28   ;;  %s2424_s27 = sphi %s2556_s27, %s3092_s27  }
  0x17   : > { %p2590_p1 = scmp.eq.s32.totalorder %s3049_s1, 0  ;;  %p482_p2 = scmp.lt.s32.totalorder %s2444_s19, 3 }
  0x18   : > { %s3066_s5 = sld [smem:[#allocation24_spill]]  ;;  %p1852_p4 = scmp.ge.s32.totalorder %s2444_s19, 2 }
  0x19   : > { %p2598_p3 = pnand %p1846_p0, %p482_p2  ;;  %s2446_s24 = smov [#allocation6]  }
  0x1a   : > { %s499_s25 = sshll.u32 %s2446_s24, 4  ;;  %s3068_s13 = sld [smem:[#allocation28_spill]]  ;;  %s500_s25 = int_to_ptr.vmem [resolvable:$true] %s499_s25 }
  0x1b   : > { %p2011_p5 = pneg %p2598_p3  ;;  %s2447_s22 = smov [#allocation9]  }
  0x1c   : > { %s2448_s24 = smov 64   ;;  %s2449_s17 = smov 4  }
  0x1d   : > { %p2610_p6 = pnand %p2011_p5, %p2590_p1  ;;  %s3070_s6 = sld [smem:[#allocation25_spill]] }
  0x1e   : > { %s497_s2 = sshll.u32 %s3066_s5, 4  ;;  %s540_s5 = sshll.u32 %s2447_s22, 4  ;;  %s498_s2 = int_to_ptr.hbm [resolvable:$true] %s497_s2  ;;  %s541_s5 = int_to_ptr.vmem [resolvable:$true] %s540_s5 }
  0x1f   : > { %2014 = dma.hbm_to_vmem [thread:$0]  (!%p2610_p6), %s498_s2, 16, %s500_s25, [#allocation7]  }
  0x20   : > { %s538_s18 = sshll.u32 %s3068_s13, 4  ;;  %s2450_s14 = smov [#allocation8]   ;;  %s539_s18 = int_to_ptr.hbm [resolvable:$true] %s538_s18 }
  0x21   : > { %2020 = dma.hbm_to_vmem [thread:$0]  (!%p2610_p6), %s539_s18, 256, %s541_s5, [#allocation10], %s2448_s24, %s2448_s24, %s2449_s17  }
  0x22   : > { %s511_s8 = sshll.u32 %s2450_s14, 4  ;;  %s555_s2 = sshll.u32 %s3045_s15, 4  ;;  %s512_s8 = int_to_ptr.vmem [resolvable:$true] %s511_s8  ;;  %s556_s2 = int_to_ptr.hbm [resolvable:$true] %s555_s2 }
  0x23   : > { %s509_s13 = sshll.u32 %s3070_s6, 4  ;;  %s2451_s5 = smov [#allocation11]   ;;  %s510_s13 = int_to_ptr.hbm [resolvable:$true] %s509_s13 }
  0x24   : > { %2017 = dma.hbm_to_vmem [thread:$0]  (!%p2610_p6), %s510_s13, 16, %s512_s8, [#allocation7]  }
  0x25   : > { %s557_s18 = sshll.u32 %s2451_s5, 4  ;;  %s569_s14 = sshll.u32 %s3046_s16, 4  ;;  %s558_s18 = int_to_ptr.vmem [resolvable:$true] %s557_s18  ;;  %s570_s14 = int_to_ptr.hbm [resolvable:$true] %s569_s14 }
  0x26   : > { %2023 = dma.hbm_to_vmem [thread:$0]  (!%p2610_p6), %s556_s2, 256, %s558_s18, [#allocation10], %s2448_s24, %s2448_s24, %s2449_s17  }
  0x27   : > { %s2452_s8 = smov [#allocation12]   ;;  %s1845_s13 = sadd.s32 4294967294, %s2444_s19  }
  0x28   : > { %s571_s12 = sshll.u32 %s2452_s8, 4  ;;  %s49_s26 = sadd.s32 1, %s2440_s0  ;;  %s572_s12 = int_to_ptr.vmem [resolvable:$true] %s571_s12 }
  0x29   : > { %2026 = dma.hbm_to_vmem [thread:$0]  (!%p2610_p6), %s570_s14, 256, %s572_s12, [#allocation13], %s2448_s24, %s2448_s24, %s2449_s17  }
  0x2a   : > { %s136_s22 = sadd.s32 1, %s2432_s29  ;;  %p51_p7 = scmp.ge.s32.totalorder %s49_s26, 2 }
  0x2b   : > { %p143_p8 = scmp.ne.s32.totalorder %s2432_s29, %s2428_s28  ;;  %p144_p9 = scmp.eq.s32.totalorder %s2444_s19, 0 }
  0x2c   : > { %p149_p10 = scmp.ne.s32.totalorder %s2428_s28, %s2424_s27  ;;  %s3098_s26 = smov (%p51_p7, %s49_s26), 0 }
  0x2d   : > { %p2643_p11 = por %p144_p9, %p143_p8  ;;  %s133_s21 = ssub.s32 %s2440_s0, %s3098_s26 }
  0x2e   : > { %p2649_p12 = por %p2590_p1, %p149_p10  ;;  %s3073_s24 = sadd.s32 4294967295, %s2444_s19  }
  0x2f   : > { %p469_p13 = scmp.eq.s32.totalorder %s3073_s24, 1  ;;  %p134_p0 = scmp.eq.s32.totalorder %s133_s21, 0 }
  0x30   : > { %p475_p2 = scmp.eq.s32.totalorder %s1845_s13, 1  ;;  %p2040_p6 = scmp.lt.s32.totalorder %s2444_s19, 2 }
  0x31   : > { %p2657_p5 = por %p469_p13, %p143_p8  ;;  %s615_s1 = sand.u32 1, %s2432_s29  }
  0x32   : > { %s2663_s18 = scalar_select %p134_p0, %s2432_s29, %s136_s22  }
  0x33   : > { %p2665_p7 = por %p475_p2, %p149_p10  ;;  %s3076_s3 = sld [smem:[#allocation23_spill]] }
  0x34   : > { %s618_s6 = scalar_lea.vmem [#allocation3], %s615_s1  ;;  %p2028_p8 = pnand %p2040_p6, %p2643_p11 }
  0x35   : > { %s625_s24 = sshll.u32 %s618_s6, 4  ;;  %s616_s13 = scalar_lea.sflag [#allocation4], %s615_s1  ;;  %s626_s24 = int_to_ptr.vmem [resolvable:$true] %s625_s24 }
  0x36   : > { %s2679_s22 = sand.u32 (!%p2598_p3), 1, %s2428_s28  }
  0x37   : > { %634 = sbr.rel (%p2598_p3) target bundleno = 1656 (0x678), region = 92  ;;  %s637_s14 = scalar_lea.sflag (!%p2598_p3), [#allocation4], %s2679_s22 }
  0x38   : > { %s639_s8 = scalar_lea.vmem (!%p2598_p3), [#allocation3], %s2679_s22 }
  0x39   : > { %s621_s12 = scalar_lea.hbm %s3076_s3, %s2440_s0 }
  0x3a   : > { %s623_s21 = sshll.u32 %s621_s12, 4  ;;  %s624_s21 = int_to_ptr.hbm [resolvable:$true] %s623_s21 }
  0x3b   : > { %2030 = dma.hbm_to_vmem [thread:$0]  (!%p2028_p8), %s624_s21, 16, %s626_s24, %s616_s13  }
  0x3c   : > { %2403 = dma.done.wait (%p2649_p12), %s637_s14, 16  }
  0x3d   : > { %2405 = vsyncadd (%p2649_p12), %s637_s14, 4294967280 }
  0x3e   : > { %2407 = dma.done.wait (%p2590_p1), [#allocation7], 32  }
  0x3f   : > { %2409 = vsyncadd (%p2590_p1), [#allocation7], 4294967264 }
  0x40   : > { %2411 = dma.done.wait (%p2590_p1), [#allocation10], 512  }
  0x41   : > { %2413 = vsyncadd (%p2590_p1), [#allocation10], 4294966784 }
  0x42   : > { %2415 = dma.done.wait (%p2590_p1), [#allocation13], 256  }
  0x43   : > { %2417 = vsyncadd (%p2590_p1), [#allocation13], 4294967040  ;;  %p735_p3 = scmp.lt.s32.totalorder %s2436_s30, 1  ;;  %s3077_s12 = sld [smem:[#allocation21_spill]]  ;;  %vm761_vm0 = vcmask 261120   ;;  %v2453_v9 = vmov 32.0  }
  0x44   : > { %s3078_s14 = sld [smem:[#allocation20_spill]]  ;;  %2118 = vrcp.f32 %v2453_v9  ;;  %v1969_v13 = vld [vmem:[%s3039_s9 + $0x8] sm:$0xff]  ;;  %v1968_v16 = vld [vmem:[%s3039_s9] sm:$0xff]  ;;  %v2110_v45 = vld [vmem:[#allocation6] ss:$0 sm:$0xff]  ;;  %vm956_vm11 = vcmask 64512  }
  0x45   : > { %s2701_s6 = scalar_select %p735_p3, %s2436_s30, 1  ;;  %v1971_v14 = vld [vmem:[%s3041_s11 + $0x8] sm:$0xff]  ;;  %905 = vmatpush.bf16.msra.mxu1 %v1969_v13  ;;  %v1970_v17 = vld [vmem:[%s3041_s11] sm:$0xff]  ;;  %vm999_vm12 = vcmask 1043456  }
  0x46   : > { %939 = vmatpush.bf16.msra.mxu3 %v1971_v14  ;;  %v1967_v20 = vld [vmem:[%s3037_s7 + $0x8] sm:$0xff]  ;;  %v1966_v25 = vld [vmem:[%s3037_s7] sm:$0xff]  ;;  %s3079_s21 = sld [smem:[#allocation22_spill]] }
  0x47   : > { %s1862_s23 = sshll.u32 %s2701_s6, 3  ;;  %s1965_s2 = sshll.u32 %s2701_s6, 4  ;;  %866 = vmatpush.bf16.msra.mxu0 %v1967_v20  ;;  %v2111_v54 = vld [vmem:[%s3034_s4] ss:$0 sm:$0xff] }
  0x48   : > { %s3080_s1 = sld [smem:[#allocation27_spill]] }
  0x49   : > { %s747_s24 = scalar_lea.vmem %s3077_s12, %s1862_s23  ;;  %906 = vmatpush.bf16.msra.mxu1 %v1968_v16  ;;  %s2454_s12 = smov 112  }
  0x4a   : > { %s742_s20 = scalar_lea.vmem %s3078_s14, %s1965_s2  ;;  %v2713_v0 = vld [vmem:[%s747_s24] sm:$0xff]  ;;  %v2119_v10 = vpop.eup %2118  ;;  %940 = vmatpush.bf16.msra.mxu3 %v1970_v17  ;;  %s2455_s24 = smov 120  }
  0x4b   : > { %v2715_v1 = vld [vmem:[%s742_s20] sm:$0xff]  ;;  %v814_v2 = vmul.f32 %v2713_v0, %v2713_v0  ;;  %v2721_v4 = vld [vmem:[%s742_s20 + $0x8] sm:$0xff]  ;;  %v769_v11 = vmul.f32 32.0, %v2119_v10  ;;  %vm773_vm1 = vweird.f32 %v2119_v10  ;;  %867 = vmatpush.bf16.msra.mxu0 %v1966_v25  ;;  %s3052_s14 = smov 8   ;;  %s2459_s20 = smov 24  }
  0x4c   : > { %v759_v3 = vmul.f32 %v2715_v1, %v2715_v1  ;;  %v760_v7 = vmul.f32 %v2721_v4, %v2721_v4  ;;  %s751_s13 = scalar_lea.vmem %s3079_s21, %s1862_s23  ;;  %s2456_s21 = smov 104  }
  0x4d   : > { %v815_v5 = vsel %vm761_vm0, %v814_v2, 0.0  ;;  %v770_v12 = vsub.f32 1.0, %v769_v11  ;;  %v2756_v46 = vld [vmem:[%s751_s13] sm:$0x3f]  ;;  %s3081_s23 = sld [smem:[#allocation26_spill]]  ;;  %s1986_s2 = sshll.u32 %s2436_s30, 4 }
  0x4e   : > { %v762_v6 = vsel %vm761_vm0, %v759_v3, 0.0  ;;  %816 = vadd.xlane.f32.xlu1 %v815_v5  ;;  %v765_v8 = vsel %vm761_vm0, %v760_v7, 0.0  ;;  %v2764_v55 = vadd.f32 1.0, %v2756_v46  ;;  %v810_v2 = vperm.slane %v2756_v46, 0  ;;  %s1657_s30 = scalar_lea.sflag [#allocation5], %s2679_s22 }
  0x4f   : > { %763 = vadd.xlane.f32.xlu0 %v762_v6  ;;  %v771_v15 = vmul.f32 %v2119_v10, %v770_v12  ;;  %v2113_v12 = vld [vmem:[%s3080_s1] ss:$0 sm:$0xff]  ;;  %s3088_s1 = sld [smem:[#allocation29_spill]] }
  0x50   : > { %v807_v60 = vperm.slane %v2764_v55, 1 }
  0x51   : > { %v772_v18 = vadd.f32 %v2119_v10, %v771_v15 }
  0x53   : > { %v2740_v19 = vsel %vm773_vm1, %v2119_v10, %v772_v18 }
  0x57   : > { %766 = vadd.xlane.f32.xlu0 %v765_v8  ;;  %v2112_v8 = vld [vmem:[%s3040_s10] ss:$0 sm:$0xff] }
  0xc1   : > { %v817_v21 = vpop.xlane.xlu1 %816 }
  0xc2   : > { %v764_v22 = vpop.xlane.xlu0 %763  ;;  %v818_v23 = vmul.f32 %v817_v21, %v2740_v19 }
  0xc3   : > { %v775_v24 = vmul.f32 %v2740_v19, %v764_v22 }
  0xc4   : > { %v819_v26 = vadd.f32 1e-06, %v818_v23  ;;  %v2114_v23 = vld [vmem:[%s3081_s23] ss:$0 sm:$0xff] }
  0xc5   : > { %v777_v27 = vadd.f32 1e-06, %v775_v24 }
  0xc6   : > { %2120 = vrsqrt.f32 %v819_v26  ;;  %vm826_vm5 = vweird.f32 %v819_v26 }
  0xc7   : > { %2122 = vrsqrt.f32 %v777_v27  ;;  %vm785_vm3 = vweird.f32 %v777_v27 }
  0xca   : > { %v767_v28 = vpop.xlane.xlu0 %766 }
  0xcb   : > { %v776_v29 = vmul.f32 %v2740_v19, %v767_v28 }
  0xcc   : > { %v2121_v30 = vpop.eup %2120 }
  0xcd   : > { %v778_v31 = vadd.f32 1e-06, %v776_v29  ;;  %v2123_v32 = vpop.eup %2122  ;;  %v821_v33 = vmul.f32 %v2121_v30, %v819_v26  ;;  %vm827_vm2 = vweird.f32 %v2121_v30 }
  0xce   : > { %v780_v34 = vmul.f32 %v2123_v32, %v777_v27  ;;  %vm786_vm4 = vweird.f32 %v2123_v32  ;;  %vm828_vm6 = vmor %vm826_vm5, %vm827_vm2 }
  0xcf   : > { %2124 = vrsqrt.f32 %v778_v31  ;;  %v822_v35 = vmul.f32 %v2121_v30, %v821_v33  ;;  %vm787_vm7 = vmor %vm785_vm3, %vm786_vm4  ;;  %vm795_vm8 = vweird.f32 %v778_v31 }
  0xd0   : > { %v781_v36 = vmul.f32 %v2123_v32, %v780_v34 }
  0xd1   : > { %v823_v37 = vmul.f32 0.5, %v822_v35 }
  0xd2   : > { %v782_v38 = vmul.f32 0.5, %v781_v36 }
  0xd3   : > { %v824_v39 = vsub.f32 1.5, %v823_v37 }
  0xd4   : > { %v783_v41 = vsub.f32 1.5, %v782_v38 }
  0xd5   : > { %v2125_v40 = vpop.eup %2124  ;;  %v825_v42 = vmul.f32 %v2121_v30, %v824_v39 }
  0xd6   : > { %v790_v43 = vmul.f32 %v2125_v40, %v778_v31  ;;  %v784_v44 = vmul.f32 %v2123_v32, %v783_v41  ;;  %vm796_vm9 = vweird.f32 %v2125_v40 }
  0xd7   : > { %v829_v48 = vsel %vm828_vm6, %v2121_v30, %v825_v42  ;;  %vm797_vm10 = vmor %vm795_vm8, %vm796_vm9  ;;  %v2115_v42 = vld [vmem:[%s639_s8] ss:$0 sm:$0xff]  ;;  %s2457_s8 = smov 16  }
  0xd8   : > { %v791_v47 = vmul.f32 %v2125_v40, %v790_v43  ;;  %v788_v49 = vsel %vm787_vm7, %v2123_v32, %v784_v44  ;;  %v830_v50 = vmul.f32 %v829_v48, %v2713_v0 }
  0xd9   : > { %v799_v52 = vmul.f32 %v788_v49, %v2715_v1 }
  0xda   : > { %v792_v51 = vmul.f32 0.5, %v791_v47  ;;  %v834_v53 = vmul.f32 %v2110_v45, %v830_v50 }
  0xdb   : > { %v804_v59 = vmul.f32 %v2111_v54, %v799_v52 }
  0xdc   : > { %v793_v56 = vsub.f32 1.5, %v792_v51  ;;  %v836_v57 = vpack.c.bf16 %v834_v53, %v834_v53 }
  0xdd   : > { %v808_v0 = vmul.f32 %v807_v60, %v804_v59 }
  0xde   : > { %v794_v58 = vmul.f32 %v2125_v40, %v793_v56  ;;  %1881 = vmatmul.msk.bf16.vlgmr.msra.gmra.mxu1 %vm761_vm0, %v836_v57  ;;  %1890 = vmatmul.msk.bf16.vlgmr.msra.gmra.mxu3 %vm761_vm0, %v836_v57 }
  0xdf   : > { %v811_v5 = vadd.f32 %v810_v2, %v808_v0 }
  0xe0   : > { %v798_v61 = vsel %vm797_vm10, %v2125_v40, %v794_v58 }
  0xe1   : > { %v800_v62 = vmul.f32 %v798_v61, %v2721_v4 }
  0xe3   : > { %v805_v63 = vmul.f32 %v2111_v54, %v800_v62 }
  0xe5   : > { %v809_v3 = vmul.f32 %v807_v60, %v805_v63 }
  0xe7   : > { %v812_v6 = vadd.f32 %v810_v2, %v809_v3 }
  0xe9   : > { %v835_v7 = vpack.c.bf16 %v812_v6, %v811_v5 }
  0xeb   : > { %1872 = vmatmul.msk.bf16.vlgmr.msra.gmra.mxu0 %vm761_vm0, %v835_v7 }
 0x15b   : > { %v908_v9 = vpop.f32.mrf.mxu1 }
 0x15c   : > { %v909_v10 = vadd.f32 %v2112_v8, %v908_v9 }
 0x15e   : > { %v912_v11 = vpack.c.bf16 %v909_v10, %v909_v10 }
 0x160   : > { %v1052_v13 = vunpack.c.l.b16 %v912_v11  ;;  %v961_v14 = vsel %vm956_vm11, %v912_v11, 0 }
 0x161   : > { %v942_v15 = vpop.f32.mrf.mxu3  ;;  %970 = vmatpush.bf16.xpose.msrb.mxu3 %v961_v14 }
 0x162   : > { %v1053_v16 = vpack.c.b16 %v1052_v13, %v1052_v13  ;;  %v943_v17 = vadd.f32 %v2113_v12, %v942_v15 }
 0x163   : > { %v910_v18 = vpop.f32.mrf.mxu1 }
 0x164   : > { %v2779_v20 = vpack.c.bf16 %v943_v17, %v943_v17  ;;  %1163 = vrot.lane.b32.xlu2 %v1053_v16, %s2454_s12  ;;  %1054 = vrot.lane.b32.xlu1 %v1053_v16, %s2455_s24 }
 0x165   : > { %1269 = vrot.lane.b32.xlu0 %v1053_v16, %s2456_s21 }
 0x166   : > { %v1001_v21 = vsel %vm999_vm12, %v2779_v20, 0  ;;  %v1096_v11 = vunpack.c.l.b16 %v2779_v20 }
 0x167   : > { %1010 = vmatpush.bf16.msrb.mxu0 %v1001_v21 }
 0x168   : > { %v869_v22 = vpop.f32.mrf.mxu0  ;;  %v1097_v14 = vpack.c.b16 %v1096_v11, %v1096_v11 }
 0x169   : > { %v944_v24 = vpop.f32.mrf.mxu3  ;;  %v870_v25 = vadd.f32 %v2114_v23, %v869_v22 }
 0x16b   : > { %v874_v27 = vpack.c.bf16 %v870_v25, %v870_v25 }
 0x16d   : > { %v953_v30 = vunpack.c.l.b16 %v874_v27 }
 0x170   : > { %v871_v26 = vpop.f32.mrf.mxu0 }
 0x171   : > { %v872_v28 = vadd.f32 %v2114_v23, %v871_v26 }
 0x173   : > { %v875_v29 = vpack.c.bf16 %v872_v28, %v872_v28 }
 0x175   : > { %v954_v31 = vunpack.c.l.b16 %v875_v29 }
 0x177   : > { %v955_v32 = vpack.c.b16 %v954_v31, %v953_v30 }
 0x179   : > { %1049 = vrot.lane.b32.xlu2 %v955_v32, %s2455_s24  ;;  %1891 = vmatmul.msk.bf16.vlgmr.msrb.gmra.mxu3 %vm956_vm11, %v955_v32 }
 0x181   : > { %1161 = vrot.lane.b32.xlu2 %v955_v32, %s2454_s12 }
 0x189   : > { %1267 = vrot.lane.b32.xlu2 %v955_v32, %s2456_s21 }
 0x1be   : > { %v1164_v33 = vpop.permute.xlu2 %1163 }
 0x1bf   : > { %v1169_v34 = vsel %vm956_vm11, %v1164_v33, 0 }
 0x1c0   : > { %1178 = vmatpush.bf16.xpose.msra.mxu3 %v1169_v34 }
 0x1d3   : > { %v1050_v35 = vpop.permute.xlu2 %1049 }
 0x1d6   : > { %v1055_v36 = vpop.permute.xlu1 %1054 }
 0x1d7   : > { %v1270_v37 = vpop.permute.xlu0 %1269  ;;  %v1060_v38 = vsel %vm956_vm11, %v1055_v36, 0 }
 0x1d8   : > { %v1275_v39 = vsel %vm956_vm11, %v1270_v37, 0  ;;  %1069 = vmatpush.bf16.xpose.msrb.mxu1 %v1060_v38 }
 0x1db   : > { %v1162_v40 = vpop.permute.xlu2 %1161 }
 0x1dc   : > { %1895 = vmatmul.msk.bf16.vlgmr.msra.gmra.mxu3 %vm956_vm11, %v1162_v40 }
 0x1df   : > { %1893 = vmatmul.msk.bf16.vlgmr.msrb.gmra.mxu1 %vm956_vm11, %v1050_v35 }
 0x1e0   : > { %1284 = vmatpush.bf16.xpose.msra.mxu1 %v1275_v39 }
 0x1e3   : > { %v1268_v41 = vpop.permute.xlu2 %1267 }
 0x1ef   : > { %1897 = vmatmul.msk.bf16.vlgmr.msra.gmra.mxu1 %vm956_vm11, %v1268_v41 }
 0x1fc   : > { %v972_v43 = vpop.f32.mrf.mxu3 }
 0x1fd   : > { %v973_v44 = vadd.f32 %v2115_v42, %v972_v43 }
 0x1ff   : > { %v977_v45 = vsel %vm956_vm11, %v973_v44, -inf }
 0x200   : > { %978 = vmax.xlane.f32.xlu0 %v977_v45 }
 0x204   : > { %v974_v47 = vpop.f32.mrf.mxu3 }
 0x205   : > { %v975_v48 = vadd.f32 %v2115_v42, %v974_v47 }
 0x207   : > { %v980_v49 = vsel %vm956_vm11, %v975_v48, -inf }
 0x208   : > { %981 = vmax.xlane.f32.xlu2 %v980_v49 }
 0x25c   : > { %v1071_v50 = vpop.f32.mrf.mxu1 }
 0x25d   : > { %v1072_v51 = vadd.f32 %v2115_v42, %v1071_v50 }
 0x25f   : > { %v1180_v52 = vpop.f32.mrf.mxu3  ;;  %v1076_v54 = vsel %vm956_vm11, %v1072_v51, -inf }
 0x260   : > { %v1181_v53 = vadd.f32 %v2115_v42, %v1180_v52  ;;  %1077 = vmax.xlane.f32.xlu2 %v1076_v54 }
 0x262   : > { %v1185_v56 = vsel %vm956_vm11, %v1181_v53, -inf }
 0x263   : > { %1186 = vmax.xlane.f32.xlu0 %v1185_v56 }
 0x264   : > { %v1073_v57 = vpop.f32.mrf.mxu1 }
 0x265   : > { %v1074_v58 = vadd.f32 %v2115_v42, %v1073_v57 }
 0x267   : > { %v1182_v59 = vpop.f32.mrf.mxu3  ;;  %v1079_v61 = vsel %vm956_vm11, %v1074_v58, -inf }
 0x268   : > { %v1183_v60 = vadd.f32 %v2115_v42, %v1182_v59  ;;  %1080 = vmax.xlane.f32.xlu1 %v1079_v61 }
 0x26a   : > { %v1188_v62 = vsel %vm956_vm11, %v1183_v60, -inf }
 0x26b   : > { %1189 = vmax.xlane.f32.xlu2 %v1188_v62 }
 0x26c   : > { %v1286_v63 = vpop.f32.mrf.mxu1 }
 0x26d   : > { %v1287_v0 = vadd.f32 %v2115_v42, %v1286_v63 }
 0x26f   : > { %v1291_v2 = vsel %vm956_vm11, %v1287_v0, -inf }
 0x270   : > { %1292 = vmax.xlane.f32.xlu0 %v1291_v2 }
 0x273   : > { %v979_v3 = vpop.xlane.xlu0 %978 }
 0x274   : > { %v1288_v5 = vpop.f32.mrf.mxu1  ;;  %v983_v7 = vsub.f32 %v973_v44, %v979_v3 }
 0x275   : > { %v1289_v6 = vadd.f32 %v2115_v42, %v1288_v5 }
 0x276   : > { %v985_v9 = vmul.f32 1.442695, %v983_v7 }
 0x277   : > { %v1294_v8 = vsel %vm956_vm11, %v1289_v6, -inf }
 0x278   : > { %1295 = vmax.xlane.f32.xlu2 %v1294_v8  ;;  %2126 = vpow2.f32 %v985_v9 }
 0x27b   : > { %v982_v10 = vpop.xlane.xlu2 %981 }
 0x27c   : > { %v984_v12 = vsub.f32 %v975_v48, %v982_v10 }
 0x27e   : > { %v987_v13 = vmul.f32 1.442695, %v984_v12  ;;  %v2811_v15 = vpop.eup %2126 }
 0x280   : > { %2128 = vpow2.f32 %v987_v13 }
 0x281   : > { %1098 = vrot.lane.b32.xlu1 %v1097_v14, %s2455_s24  ;;  %s3090_s24 = sld [smem:[#allocation31_spill]] }
 0x284   : > { %1310 = vrot.lane.b32.xlu0 %v1097_v14, %s2456_s21  ;;  %s3089_s21 = sld [smem:[#allocation30_spill]] }
 0x286   : > { %v2129_v16 = vpop.eup %2128 }
 0x287   : > { %v995_v17 = vpack.c.bf16 %v2129_v16, %v2811_v15  ;;  %v992_v42 = vsel %vm956_vm11, %v2129_v16, 0.0  ;;  %s1670_s13 = scalar_lea.hbm %s3090_s24, %s1986_s2 }
 0x288   : > { %s1673_s23 = sshll.u32 %s1670_s13, 4  ;;  %s1674_s23 = int_to_ptr.hbm [resolvable:$true] %s1673_s23 }
 0x289   : > { %1892 = vmatmul.msk.bf16.vlgmr.msrb.gmra.mxu0 %vm956_vm11, %v995_v17 }
 0x290   : > { %1204 = vrot.lane.b32.xlu2 %v1097_v14, %s2454_s12  ;;  %s2370_s12 = scalar_lea.hbm %s3090_s24, 32 }
 0x2d3   : > { %v1078_v18 = vpop.xlane.xlu2 %1077 }
 0x2d4   : > { %v1082_v20 = vsub.f32 %v1072_v51, %v1078_v18 }
 0x2d6   : > { %v1187_v21 = vpop.xlane.xlu0 %1186  ;;  %v1084_v22 = vmul.f32 1.442695, %v1082_v20 }
 0x2d7   : > { %v1191_v23 = vsub.f32 %v1181_v53, %v1187_v21 }
 0x2d8   : > { %2130 = vpow2.f32 %v1084_v22 }
 0x2d9   : > { %v1193_v24 = vmul.f32 1.442695, %v1191_v23 }
 0x2db   : > { %2132 = vpow2.f32 %v1193_v24  ;;  %v1081_v25 = vpop.xlane.xlu1 %1080 }
 0x2dc   : > { %v1083_v26 = vsub.f32 %v1074_v58, %v1081_v25 }
 0x2de   : > { %v1190_v27 = vpop.xlane.xlu2 %1189  ;;  %v2131_v28 = vpop.eup %2130  ;;  %v1086_v29 = vmul.f32 1.442695, %v1083_v26 }
 0x2df   : > { %v1192_v30 = vsub.f32 %v1183_v60, %v1190_v27  ;;  %v1088_v31 = vsel %vm956_vm11, %v2131_v28, 0.0  ;;  %v989_v60 = vsel %vm956_vm11, %v2811_v15, 0.0 }
 0x2e0   : > { %2134 = vpow2.f32 %v1086_v29  ;;  %1089 = vadd.xlane.f32.xlu1 %v1088_v31 }
 0x2e1   : > { %v2133_v32 = vpop.eup %2132  ;;  %v1195_v33 = vmul.f32 1.442695, %v1192_v30 }
 0x2e2   : > { %v1197_v34 = vsel %vm956_vm11, %v2133_v32, 0.0 }
 0x2e3   : > { %2136 = vpow2.f32 %v1195_v33  ;;  %1198 = vadd.xlane.f32.xlu2 %v1197_v34  ;;  %v1293_v35 = vpop.xlane.xlu0 %1292 }
 0x2e4   : > { %v1297_v36 = vsub.f32 %v1287_v0, %v1293_v35 }
 0x2e6   : > { %v2135_v37 = vpop.eup %2134  ;;  %v1299_v38 = vmul.f32 1.442695, %v1297_v36 }
 0x2e7   : > { %v1091_v39 = vsel %vm956_vm11, %v2135_v37, 0.0  ;;  %v1094_v56 = vpack.c.bf16 %v2135_v37, %v2131_v28 }
 0x2e8   : > { %2138 = vpow2.f32 %v1299_v38  ;;  %1092 = vadd.xlane.f32.xlu0 %v1091_v39 }
 0x2e9   : > { %v2137_v40 = vpop.eup %2136 }
 0x2ea   : > { %v1200_v41 = vsel %vm956_vm11, %v2137_v40, 0.0  ;;  %v1203_v57 = vpack.c.bf16 %v2137_v40, %v2133_v32 }
 0x2eb   : > { %1201 = vadd.xlane.f32.xlu1 %v1200_v41  ;;  %993 = vadd.xlane.f32.xlu2 %v992_v42  ;;  %v1296_v43 = vpop.xlane.xlu2 %1295 }
 0x2ec   : > { %v1298_v44 = vsub.f32 %v1289_v6, %v1296_v43 }
 0x2ee   : > { %v2139_v45 = vpop.eup %2138  ;;  %v1301_v47 = vmul.f32 1.442695, %v1298_v44 }
 0x2ef   : > { %v1303_v48 = vsel %vm956_vm11, %v2139_v45, 0.0 }
 0x2f0   : > { %2140 = vpow2.f32 %v1301_v47 }
 0x2f3   : > { %1304 = vadd.xlane.f32.xlu1 %v1303_v48  ;;  %v1099_v49 = vpop.permute.xlu1 %1098  ;;  %v1205_v50 = vpop.permute.xlu2 %1204 }
 0x2f4   : > { %v1210_v51 = vsel %vm999_vm12, %v1205_v50, 0  ;;  %v1104_v52 = vsel %vm999_vm12, %v1099_v49, 0 }
 0x2f5   : > { %1113 = vmatpush.bf16.msra.mxu2 %v1104_v52  ;;  %1219 = vmatpush.bf16.msra.mxu0 %v1210_v51 }
 0x2f6   : > { %v2141_v53 = vpop.eup %2140  ;;  %v1311_v54 = vpop.permute.xlu0 %1310 }
 0x2f7   : > { %v1306_v58 = vsel %vm956_vm11, %v2141_v53, 0.0  ;;  %v1316_v59 = vsel %vm999_vm12, %v1311_v54, 0  ;;  %v1309_v61 = vpack.c.bf16 %v2141_v53, %v2139_v45 }
 0x2f8   : > { %1894 = vmatmul.msk.bf16.vlgmr.msra.gmra.mxu2 %vm956_vm11, %v1094_v56  ;;  %1307 = vadd.xlane.f32.xlu0 %v1306_v58 }
 0x2f9   : > { %1896 = vmatmul.msk.bf16.vlgmr.msra.gmra.mxu0 %vm956_vm11, %v1203_v57  ;;  %1325 = vmatpush.bf16.msrb.mxu2 %v1316_v59 }
 0x2fb   : > { %990 = vadd.xlane.f32.xlu1 %v989_v60 }
 0x306   : > { %v2841_v8 = vpop.f32.mrf.mxu0 }
 0x308   : > { %1898 = vmatmul.msk.bf16.vlgmr.msrb.gmra.mxu2 %vm956_vm11, %v1309_v61 }
 0x30e   : > { %v1014_v26 = vpop.f32.mrf.mxu0 }
 0x353   : > { %v2832_v62 = vpop.xlane.xlu1 %1089 }
 0x354   : > { %vm1125_vm6 = vweird.f32 %v2832_v62  ;;  %v1131_v44 = vand.u32 2147483648, %v2832_v62  ;;  %v1129_v49 = vand.u32 2147483647, %v2832_v62 }
 0x356   : > { %v1199_v63 = vpop.xlane.xlu2 %1198  ;;  %v1132_v59 = vor.u32 1.1754944e-38, %v1131_v44  ;;  %vm1130_vm10 = vcmp.eq.f32.partialorder %v1129_v49, 8.507059e+37 }
 0x357   : > { %2142 = vrcp.f32 %v1199_v63  ;;  %v1237_v33 = vand.u32 2147483648, %v1199_v63  ;;  %vm1231_vm3 = vweird.f32 %v1199_v63  ;;  %v1235_v35 = vand.u32 2147483647, %v1199_v63 }
 0x358   : > { %2144 = vrcp.f32 %v2832_v62 }
 0x359   : > { %v1238_v43 = vor.u32 1.1754944e-38, %v1237_v33  ;;  %vm1236_vm7 = vcmp.eq.f32.partialorder %v1235_v35, 8.507059e+37 }
 0x35b   : > { %v2839_v7 = vpop.xlane.xlu0 %1092 }
 0x35c   : > { %vm1139_vm12 = vweird.f32 %v2839_v7 }
 0x35d   : > { %v2143_v3 = vpop.eup %2142 }
 0x35e   : > { %v2835_v0 = vpop.xlane.xlu1 %1201  ;;  %v994_v2 = vpop.xlane.xlu2 %993  ;;  %v1227_v6 = vmul.f32 %v2143_v3, %v1199_v63  ;;  %vm1232_vm1 = vweird.f32 %v2143_v3 }
 0x35f   : > { %2146 = vrcp.f32 %v994_v2  ;;  %v2837_v5 = vpop.eup %2144  ;;  %v1042_v15 = vand.u32 2147483648, %v994_v2  ;;  %v1040_v18 = vand.u32 2147483647, %v994_v2  ;;  %vm1036_vm14 = vweird.f32 %v994_v2  ;;  %vm2863_vm4 = vmor %vm1231_vm3, %vm1232_vm1 }
 0x360   : > { %v1121_v11 = vmul.f32 %v2837_v5, %v2832_v62  ;;  %2148 = vrcp.f32 %v2839_v7  ;;  %v1228_v13 = vsub.f32 1.0, %v1227_v6  ;;  %vm1126_vm5 = vweird.f32 %v2837_v5 }
 0x361   : > { %2150 = vrcp.f32 %v2835_v0  ;;  %v1043_v24 = vor.u32 1.1754944e-38, %v1042_v15  ;;  %vm1041_vm2 = vcmp.eq.f32.partialorder %v1040_v18, 8.507059e+37  ;;  %vm2879_vm8 = vmor %vm1125_vm6, %vm1126_vm5  ;;  %v1251_v15 = vand.u32 2147483648, %v2835_v0 }
 0x362   : > { %v1122_v16 = vsub.f32 1.0, %v1121_v11  ;;  %v1229_v20 = vmul.f32 %v2143_v3, %v1228_v13  ;;  %vm1245_vm3 = vweird.f32 %v2835_v0  ;;  %v1249_v18 = vand.u32 2147483647, %v2835_v0 }
 0x364   : > { %v1123_v28 = vmul.f32 %v2837_v5, %v1122_v16  ;;  %v1230_v31 = vadd.f32 %v2143_v3, %v1229_v20  ;;  %v1145_v16 = vand.u32 2147483648, %v2839_v7  ;;  %vm1250_vm6 = vcmp.eq.f32.partialorder %v1249_v18, 8.507059e+37 }
 0x365   : > { %v2147_v9 = vpop.eup %2146 }
 0x366   : > { %v2843_v10 = vpop.xlane.xlu1 %1304  ;;  %v1032_v12 = vmul.f32 %v2147_v9, %v994_v2  ;;  %vm1037_vm13 = vweird.f32 %v2147_v9  ;;  %v2849_v21 = vpop.eup %2148  ;;  %v1124_v37 = vadd.f32 %v2837_v5, %v1123_v28  ;;  %v1234_v39 = vsel %vm2863_vm4, %v2143_v3, %v1230_v31 }
 0x367   : > { %v2851_v23 = vpop.eup %2150  ;;  %vm1038_vm15 = vmor %vm1036_vm14, %vm1037_vm13  ;;  %v1135_v29 = vmul.f32 %v2849_v21, %v2839_v7  ;;  %v1239_v51 = vsel %vm1236_vm7, %v1238_v43, %v1234_v39  ;;  %vm1140_vm13 = vweird.f32 %v2849_v21  ;;  %v1341_v35 = vand.u32 2147483647, %v2843_v10 }
 0x368   : > { %v1033_v14 = vsub.f32 1.0, %v1032_v12  ;;  %v1241_v32 = vmul.f32 %v2851_v23, %v2835_v0  ;;  %v1128_v52 = vsel %vm2879_vm8, %v2837_v5, %v1124_v37  ;;  %vm2910_vm4 = vmor %vm1139_vm12, %vm1140_vm13 }
 0x369   : > { %v1136_v38 = vsub.f32 1.0, %v1135_v29  ;;  %v1133_v63 = vsel %vm1130_vm10, %v1132_v59, %v1128_v52  ;;  %v1252_v29 = vor.u32 1.1754944e-38, %v1251_v15  ;;  %vm1342_vm10 = vcmp.eq.f32.partialorder %v1341_v35, 8.507059e+37  ;;  %v1972_v52 = vld [vmem:[#allocation9] sm:$0xff]  ;;  %v2117_v35 = vld [vmem:[#allocation8] ss:$0 sm:$0xff] }
 0x36a   : > { %v1034_v17 = vmul.f32 %v2147_v9, %v1033_v14  ;;  %v1242_v41 = vsub.f32 1.0, %v1241_v32 }
 0x36b   : > { %v2872_v42 = vpop.xlane.xlu0 %1307  ;;  %v1137_v56 = vmul.f32 %v2849_v21, %v1136_v38 }
 0x36c   : > { %v1035_v22 = vadd.f32 %v2147_v9, %v1034_v17  ;;  %v1243_v60 = vmul.f32 %v2851_v23, %v1242_v41  ;;  %v1357_v44 = vand.u32 2147483648, %v2872_v42  ;;  %vm1351_vm13 = vweird.f32 %v2872_v42 }
 0x36d   : > { %v1138_v5 = vadd.f32 %v2849_v21, %v1137_v56 }
 0x36e   : > { %v2853_v25 = vpop.xlane.xlu1 %990  ;;  %v1039_v27 = vsel %vm1038_vm15, %v2147_v9, %v1035_v22  ;;  %vm1246_vm15 = vweird.f32 %v2851_v23  ;;  %v1244_v12 = vadd.f32 %v2851_v23, %v1243_v60  ;;  %v1143_v22 = vand.u32 2147483647, %v2839_v7 }
 0x36f   : > { %2152 = vrcp.f32 %v2853_v25  ;;  %v1044_v30 = vsel %vm1041_vm2, %v1043_v24, %v1039_v27  ;;  %v1028_v58 = vand.u32 2147483648, %v2853_v25  ;;  %v1026_v62 = vand.u32 2147483647, %v2853_v25  ;;  %vm1247_vm5 = vmor %vm1245_vm3, %vm1246_vm15 }
 0x370   : > { %2154 = vrcp.f32 %v2843_v10  ;;  %v1046_v34 = vmul.f32 %v1044_v30, %v1014_v26  ;;  %vm1022_vm14 = vweird.f32 %v2853_v25  ;;  %v1142_v26 = vsel %vm2910_vm4, %v2849_v21, %v1138_v5 }
 0x371   : > { %2156 = vrcp.f32 %v2872_v42  ;;  %v1029_v9 = vor.u32 1.1754944e-38, %v1028_v58  ;;  %vm1027_vm2 = vcmp.eq.f32.partialorder %v1026_v62, 8.507059e+37  ;;  %v1146_v30 = vor.u32 1.1754944e-38, %v1145_v16  ;;  %v2116_v62 = vld [vmem:[%s3088_s1] ss:$0 sm:$0xff] }
 0x372   : > { %1048 = vst.msk [vmem:[#allocation2 + $0x8] sm:$0xff] %vm956_vm11, %v1046_v34  ;;  %vm1144_vm7 = vcmp.eq.f32.partialorder %v1143_v22, 8.507059e+37  ;;  %v1343_v21 = vand.u32 2147483648, %v2843_v10  ;;  %v1358_v48 = vor.u32 1.1754944e-38, %v1357_v44  ;;  %vm1370_vm3 = vcmask 261312   ;;  %v1975_v22 = vld [vmem:[#allocation11 + $0x8] sm:$0xff] }
 0x373   : > { %1490 = vmatpush.bf16.msrb.mxu0 %v1975_v22 }
 0x374   : > { %v1344_v38 = vor.u32 1.1754944e-38, %v1343_v21 }
 0x375   : > { %v2153_v40 = vpop.eup %2152 }
 0x376   : > { %v2876_v45 = vpop.eup %2154  ;;  %v1018_v47 = vmul.f32 %v2153_v40, %v2853_v25  ;;  %v1221_v50 = vpop.f32.mrf.mxu0  ;;  %vm1023_vm9 = vweird.f32 %v2153_v40  ;;  %v1248_v25 = vsel %vm1247_vm5, %v2851_v23, %v1244_v12 }
 0x377   : > { %v1254_v54 = vmul.f32 %v1239_v51, %v1221_v50  ;;  %v1333_v57 = vmul.f32 %v2876_v45, %v2843_v10  ;;  %vm1024_vm1 = vmor %vm1022_vm14, %vm1023_vm9  ;;  %v2157_v13 = vpop.eup %2156  ;;  %v1253_v7 = vsel %vm1250_vm6, %v1252_v29, %v1248_v25  ;;  %vm1338_vm8 = vweird.f32 %v2876_v45  ;;  %v1973_v51 = vld [vmem:[#allocation9 + $0x8] sm:$0xff]  ;;  %v1976_v25 = vld [vmem:[#allocation12] sm:$0xff] }
 0x378   : > { %v1019_v53 = vsub.f32 1.0, %v1018_v47  ;;  %v1347_v0 = vmul.f32 %v2157_v13, %v2872_v42  ;;  %vm1352_vm12 = vweird.f32 %v2157_v13  ;;  %v1355_v47 = vand.u32 2147483647, %v2872_v42  ;;  %1405 = vmatpush.bf16.msrb.mxu3 %v1973_v51  ;;  %v1983_v51 = vld [vmem:[%s3089_s21 + $0x28] sm:$0xff] }
 0x379   : > { %1258 = vrot.lane.b32.xlu2 %v1254_v54, %s2457_s8  ;;  %v1334_v6 = vsub.f32 1.0, %v1333_v57  ;;  %vm1353_vm14 = vmor %vm1351_vm13, %vm1352_vm12 }
 0x37a   : > { %v1020_v61 = vmul.f32 %v2153_v40, %v1019_v53  ;;  %v1348_v32 = vsub.f32 1.0, %v1347_v0  ;;  %vm1356_vm15 = vcmp.eq.f32.partialorder %v1355_v47, 8.507059e+37  ;;  %v1974_v0 = vld [vmem:[#allocation11] sm:$0xff] }
 0x37b   : > { %v1115_v3 = vpop.f32.mrf.mxu2  ;;  %v1335_v27 = vmul.f32 %v2876_v45, %v1334_v6  ;;  %1491 = vmatpush.bf16.msrb.mxu0 %v1974_v0 }
 0x37c   : > { %v1021_v2 = vadd.f32 %v2153_v40, %v1020_v61  ;;  %v1148_v11 = vmul.f32 %v1133_v63, %v1115_v3  ;;  %v1349_v37 = vmul.f32 %v2157_v13, %v1348_v32  ;;  %1406 = vmatpush.bf16.msrb.mxu3 %v1972_v52  ;;  %v1413_v63 = vperm.slane %v2756_v46, 2  ;;  %v1982_v52 = vld [vmem:[%s3089_s21 + $0x20] sm:$0xff] }
 0x37d   : > { %v1336_v34 = vadd.f32 %v2876_v45, %v1335_v27 }
 0x37e   : > { %v1025_v14 = vsel %vm1024_vm1, %v2153_v40, %v1021_v2  ;;  %1152 = vrot.lane.b32.xlu0 %v1148_v11, %s3052_s14  ;;  %v1223_v28 = vpop.f32.mrf.mxu0  ;;  %v1350_v43 = vadd.f32 %v2157_v13, %v1349_v37  ;;  %vm1158_vm1 = vcmask 130112  }
 0x37f   : > { %v1030_v17 = vsel %vm1027_vm2, %v1029_v9, %v1025_v14  ;;  %v1255_v23 = vmul.f32 %v1253_v7, %v1223_v28  ;;  %vm1264_vm2 = vcmask 195712  }
 0x380   : > { %v1045_v24 = vmul.f32 %v1030_v17, %v2841_v8  ;;  %v1147_v8 = vsel %vm1144_vm7, %v1146_v30, %v1142_v26 }
 0x382   : > { %1047 = vst.msk [vmem:[#allocation2] sm:$0xff] %vm956_vm11, %v1045_v24  ;;  %vm1337_vm11 = vweird.f32 %v2843_v10  ;;  %v1354_v10 = vsel %vm1353_vm14, %v2157_v13, %v1350_v43  ;;  %v1977_v24 = vld [vmem:[#allocation12 + $0x8] sm:$0xff]  ;;  %v1461_v43 = vperm.slane %v2756_v46, 3 }
 0x383   : > { %v1117_v31 = vpop.f32.mrf.mxu2  ;;  %vm1339_vm9 = vmor %vm1337_vm11, %vm1338_vm8  ;;  %v1359_v49 = vsel %vm1356_vm15, %v1358_v48, %v1354_v10  ;;  %1520 = vmatpush.bf16.msrb.mxu1 %v1977_v24 }
 0x384   : > { %v1149_v33 = vmul.f32 %v1147_v8, %v1117_v31  ;;  %v1340_v36 = vsel %vm1339_vm9, %v2876_v45, %v1336_v34 }
 0x385   : > { %v1345_v40 = vsel %vm1342_vm10, %v1344_v38, %v1340_v36  ;;  %v1458_v38 = vperm.slane %v2764_v55, 4  ;;  %v1985_v55 = vld [vmem:[%s3089_s21 + $0x38] sm:$0xff] }
 0x386   : > { %1260 = vrot.lane.b32.xlu0 %v1255_v23, %s2457_s8  ;;  %1154 = vrot.lane.b32.xlu1 %v1149_v33, %s3052_s14  ;;  %s2364_s8 = sshra.s32 %s1674_s23, 4  ;;  %s2365_s8 = int_to_ptr.hbm [resolvable:$true] %s2364_s8 }
 0x387   : > { %1521 = vmatpush.bf16.msrb.mxu1 %v1976_v25  ;;  %1635 = vmatpush.bf16.msra.mxu2 %v1985_v55  ;;  %p2371_p11 = scmp.lt.s32.totalorder %s2365_s8, %s3090_s24 }
 0x38b   : > { %v1327_v39 = vpop.f32.mrf.mxu2 }
 0x38c   : > { %v1360_v41 = vmul.f32 %v1345_v40, %v1327_v39 }
 0x38e   : > { %1364 = vrot.lane.b32.xlu1 %v1360_v41, %s2459_s20 }
 0x393   : > { %v1329_v45 = vpop.f32.mrf.mxu2 }
 0x394   : > { %v1361_v50 = vmul.f32 %v1359_v49, %v1329_v45 }
 0x396   : > { %1366 = vrot.lane.b32.xlu0 %v1361_v50, %s2459_s20  ;;  %v1984_v50 = vld [vmem:[%s3089_s21 + $0x30] sm:$0xff]  ;;  %s1859_s20 = sshll.u32 %s2679_s22, 4 }
 0x397   : > { %1636 = vmatpush.bf16.msra.mxu2 %v1984_v50  ;;  %s733_s17 = scalar_lea.vmem [#allocation14], %s1859_s20  ;;  %s2366_s20 = scalar_lea.hbm %s2365_s8, 16 }
 0x398   : > { %s1671_s6 = sshll.u32 %s733_s17, 4  ;;  %p2367_p1 = scmp.ne.s32.totalorder %s2365_s8, %s2366_s20  ;;  %s1672_s6 = int_to_ptr.vmem [resolvable:$true] %s1671_s6 }
 0x399   : > { %p2372_p12 = scmp.lt.s32.totalorder %s2370_s12, %s2366_s20 }
 0x39a   : > { %p2368_p9 = pnand %p2367_p1, %p2657_p5 }
 0x39b   : > { %1637 = vmatpush.bf16.msra.mxu2 %v1983_v51  ;;  %p2373_p13 = por %p2372_p12, %p2371_p11 }
 0x39c   : > { %p2369_p10 = pneg %p2368_p9 }
 0x39e   : > { %p2374_p0 = pnand %p2373_p13, %p2369_p10 }
 0x39f   : > { %1638 = vmatpush.bf16.msra.mxu2 %v1982_v52 }
 0x3d3   : > { %v1259_v54 = vpop.permute.xlu2 %1258 }
 0x3f0   : > { %v1153_v53 = vpop.permute.xlu0 %1152 }
 0x3f1   : > { %1159 = vst.msk [vmem:[#allocation2] sm:$0xff] %vm1158_vm1, %v1153_v53  ;;  %v1981_v53 = vld [vmem:[%s3089_s21 + $0x18] sm:$0xff] }
 0x3f2   : > { %1265 = vst.msk [vmem:[#allocation2] sm:$0xff] %vm1264_vm2, %v1259_v54  ;;  %1639 = vmatpush.bf16.msra.mxu2 %v1981_v53 }
 0x3f8   : > { %v1155_v56 = vpop.permute.xlu1 %1154  ;;  %v1261_v42 = vpop.permute.xlu0 %1260 }
 0x3f9   : > { %1160 = vst.msk [vmem:[#allocation2 + $0x8] sm:$0xff] %vm1158_vm1, %v1155_v56 }
 0x3fa   : > { %1266 = vst.msk [vmem:[#allocation2 + $0x8] sm:$0xff] %vm1264_vm2, %v1261_v42  ;;  %v1980_v42 = vld [vmem:[%s3089_s21 + $0x10] sm:$0xff] }
 0x3fb   : > { %1640 = vmatpush.bf16.msra.mxu2 %v1980_v42 }
 0x400   : > { %v1365_v57 = vpop.permute.xlu1 %1364 }
 0x401   : > { %1371 = vst.msk [vmem:[#allocation2] sm:$0xff] %vm1370_vm3, %v1365_v57  ;;  %v1979_v57 = vld [vmem:[%s3089_s21 + $0x8] sm:$0xff] }
 0x402   : > { %1641 = vmatpush.bf16.msra.mxu2 %v1979_v57 }
 0x408   : > { %v1367_v58 = vpop.permute.xlu0 %1366  ;;  %v1373_v59 = vld [vmem:[#allocation2] sm:$0xff] }
 0x409   : > { %1372 = vst.msk [vmem:[#allocation2 + $0x8] sm:$0xff] %vm1370_vm3, %v1367_v58 }
 0x410   : > { %v1374_v60 = vld [vmem:[#allocation2 + $0x8] sm:$0xff] }
 0x411   : > { %v1375_v61 = vpack.c.bf16 %v1374_v60, %v1373_v59 }
 0x413   : > { %1907 = vmatmul.msk.bf16.vlgmr.msrb.gmra.mxu3 %vm761_vm0, %v1375_v61  ;;  %v1978_v61 = vld [vmem:[%s3089_s21] sm:$0xff] }
 0x414   : > { %1642 = vmatpush.bf16.msra.mxu2 %v1978_v61 }
 0x496   : > { %v1408_v2 = vpop.f32.mrf.mxu3 }
 0x497   : > { %v1409_v3 = vadd.f32 %v2116_v62, %v1408_v2 }
 0x499   : > { %v1414_v5 = vmul.f32 %v1413_v63, %v1409_v3 }
 0x49b   : > { %v2942_v6 = vadd.f32 %v1414_v5, %v2715_v1 }
 0x49d   : > { %v1419_v9 = vmul.f32 %v2942_v6, %v2942_v6 }
 0x49e   : > { %v1410_v11 = vpop.f32.mrf.mxu3 }
 0x49f   : > { %v1411_v12 = vadd.f32 %v2116_v62, %v1410_v11  ;;  %v1421_v13 = vsel %vm761_vm0, %v1419_v9, 0.0 }
 0x4a0   : > { %1422 = vadd.xlane.f32.xlu2 %v1421_v13 }
 0x4a1   : > { %v1415_v14 = vmul.f32 %v1413_v63, %v1411_v12 }
 0x4a3   : > { %v2948_v15 = vadd.f32 %v1415_v14, %v2721_v4 }
 0x4a5   : > { %v1420_v16 = vmul.f32 %v2948_v15, %v2948_v15 }
 0x4a7   : > { %v1424_v17 = vsel %vm761_vm0, %v1420_v16, 0.0 }
 0x4a8   : > { %1425 = vadd.xlane.f32.xlu1 %v1424_v17 }
 0x513   : > { %v1423_v1 = vpop.xlane.xlu2 %1422 }
 0x514   : > { %v1427_v18 = vmul.f32 %v1423_v1, %v2740_v19 }
 0x516   : > { %v1429_v20 = vadd.f32 1e-06, %v1427_v18 }
 0x518   : > { %2158 = vrsqrt.f32 %v1429_v20  ;;  %vm1437_vm5 = vweird.f32 %v1429_v20 }
 0x51b   : > { %v1426_v26 = vpop.xlane.xlu1 %1425 }
 0x51c   : > { %v1428_v4 = vmul.f32 %v1426_v26, %v2740_v19 }
 0x51e   : > { %v2159_v27 = vpop.eup %2158  ;;  %v1430_v28 = vadd.f32 1e-06, %v1428_v4 }
 0x51f   : > { %v1432_v29 = vmul.f32 %v2159_v27, %v1429_v20  ;;  %vm1438_vm4 = vweird.f32 %v2159_v27 }
 0x520   : > { %2160 = vrsqrt.f32 %v1430_v28  ;;  %vm1439_vm6 = vmor %vm1437_vm5, %vm1438_vm4  ;;  %vm1447_vm8 = vweird.f32 %v1430_v28 }
 0x521   : > { %v1433_v30 = vmul.f32 %v2159_v27, %v1432_v29 }
 0x523   : > { %v1434_v7 = vmul.f32 0.5, %v1433_v30 }
 0x525   : > { %v1435_v31 = vsub.f32 1.5, %v1434_v7 }
 0x526   : > { %v2161_v8 = vpop.eup %2160 }
 0x527   : > { %v1436_v32 = vmul.f32 %v2159_v27, %v1435_v31  ;;  %v1442_v23 = vmul.f32 %v2161_v8, %v1430_v28  ;;  %vm1448_vm7 = vweird.f32 %v2161_v8 }
 0x528   : > { %vm1449_vm11 = vmor %vm1447_vm8, %vm1448_vm7 }
 0x529   : > { %v1440_v33 = vsel %vm1439_vm6, %v2159_v27, %v1436_v32  ;;  %v1443_v34 = vmul.f32 %v2161_v8, %v1442_v23 }
 0x52a   : > { %v1451_v19 = vmul.f32 %v1440_v33, %v2942_v6  ;;  %v1649_v33 = vperm.slane %v2756_v46, 5 }
 0x52b   : > { %v1444_v21 = vmul.f32 0.5, %v1443_v34 }
 0x52c   : > { %v1456_v39 = vmul.f32 %v2117_v35, %v1451_v19 }
 0x52d   : > { %v1445_v36 = vsub.f32 1.5, %v1444_v21 }
 0x52e   : > { %v1459_v44 = vmul.f32 %v1458_v38, %v1456_v39 }
 0x52f   : > { %v1446_v37 = vmul.f32 %v2161_v8, %v1445_v36 }
 0x530   : > { %v1462_v48 = vadd.f32 %v1461_v43, %v1459_v44 }
 0x531   : > { %v1450_v40 = vsel %vm1449_vm11, %v2161_v8, %v1446_v37 }
 0x532   : > { %v1452_v41 = vmul.f32 %v1450_v40, %v2948_v15 }
 0x534   : > { %v1457_v47 = vmul.f32 %v2117_v35, %v1452_v41 }
 0x536   : > { %v1460_v10 = vmul.f32 %v1458_v38, %v1457_v47 }
 0x538   : > { %v1463_v45 = vadd.f32 %v1461_v43, %v1460_v10 }
 0x53a   : > { %v1464_v49 = vpack.c.bf16 %v1463_v45, %v1462_v48 }
 0x53c   : > { %1916 = vmatmul.msk.bf16.vlgmr.msrb.gmra.mxu0 %vm761_vm0, %v1464_v49  ;;  %1925 = vmatmul.msk.bf16.vlgmr.msrb.gmra.mxu1 %vm761_vm0, %v1464_v49 }
 0x5b9   : > { %v1493_v54 = vpop.f32.mrf.mxu0  ;;  %v1523_v1 = vpop.f32.mrf.mxu1 }
 0x5ba   : > { %v1926_v56 = vmul.f32 -1.442695, %v1493_v54 }
 0x5bc   : > { %2162 = vpow2.f32 %v1926_v56 }
 0x5c1   : > { %v1495_v58 = vpop.f32.mrf.mxu0  ;;  %v1525_v31 = vpop.f32.mrf.mxu1 }
 0x5c2   : > { %v2163_v59 = vpop.eup %2162  ;;  %v1927_v60 = vmul.f32 -1.442695, %v1495_v58 }
 0x5c3   : > { %v1534_v62 = vadd.f32 1.0, %v2163_v59 }
 0x5c4   : > { %2164 = vpow2.f32 %v1927_v60 }
 0x5c5   : > { %2166 = vrcp.f32 %v1534_v62  ;;  %v1547_v14 = vand.u32 2147483648, %v1534_v62  ;;  %vm1541_vm10 = vweird.f32 %v1534_v62  ;;  %v1545_v16 = vand.u32 2147483647, %v1534_v62 }
 0x5c7   : > { %v1548_v22 = vor.u32 1.1754944e-38, %v1547_v14  ;;  %vm1546_vm13 = vcmp.eq.f32.partialorder %v1545_v16, 8.507059e+37 }
 0x5ca   : > { %v2165_v63 = vpop.eup %2164 }
 0x5cb   : > { %v2167_v2 = vpop.eup %2166  ;;  %v1535_v3 = vadd.f32 1.0, %v2165_v63 }
 0x5cc   : > { %v1537_v5 = vmul.f32 %v2167_v2, %v1534_v62  ;;  %vm1542_vm9 = vweird.f32 %v2167_v2 }
 0x5cd   : > { %2168 = vrcp.f32 %v1535_v3  ;;  %vm1543_vm12 = vmor %vm1541_vm10, %vm1542_vm9  ;;  %v1562_v24 = vand.u32 2147483648, %v1535_v3  ;;  %v1560_v25 = vand.u32 2147483647, %v1535_v3  ;;  %vm1556_vm15 = vweird.f32 %v1535_v3 }
 0x5ce   : > { %v1538_v9 = vsub.f32 1.0, %v1537_v5 }
 0x5cf   : > { %v1563_v27 = vor.u32 1.1754944e-38, %v1562_v24  ;;  %vm1561_vm2 = vcmp.eq.f32.partialorder %v1560_v25, 8.507059e+37 }
 0x5d0   : > { %v1539_v11 = vmul.f32 %v2167_v2, %v1538_v9 }
 0x5d2   : > { %v1540_v12 = vadd.f32 %v2167_v2, %v1539_v11 }
 0x5d3   : > { %v2169_v13 = vpop.eup %2168 }
 0x5d4   : > { %v1552_v17 = vmul.f32 %v2169_v13, %v1535_v3  ;;  %v1544_v18 = vsel %vm1543_vm12, %v2167_v2, %v1540_v12  ;;  %vm1557_vm14 = vweird.f32 %v2169_v13 }
 0x5d5   : > { %v1549_v26 = vsel %vm1546_vm13, %v1548_v22, %v1544_v18  ;;  %vm1558_vm1 = vmor %vm1556_vm15, %vm1557_vm14 }
 0x5d6   : > { %v1553_v20 = vsub.f32 1.0, %v1552_v17  ;;  %v1566_v28 = vmul.f32 %v1549_v26, %v1493_v54 }
 0x5d8   : > { %v1554_v0 = vmul.f32 %v2169_v13, %v1553_v20  ;;  %v1568_v8 = vmul.f32 %v1566_v28, %v1523_v1 }
 0x5da   : > { %v1555_v4 = vadd.f32 %v2169_v13, %v1554_v0 }
 0x5dc   : > { %v1559_v29 = vsel %vm1558_vm1, %v2169_v13, %v1555_v4 }
 0x5dd   : > { %v1564_v30 = vsel %vm1561_vm2, %v1563_v27, %v1559_v29 }
 0x5de   : > { %v1567_v7 = vmul.f32 %v1564_v30, %v1495_v58 }
 0x5e0   : > { %v1569_v32 = vmul.f32 %v1567_v7, %v1525_v31 }
 0x5e2   : > { %v1570_v23 = vpack.c.bf16 %v1569_v32, %v1568_v8 }
 0x5e4   : > { %1643 = vmatmul.bf16.vlgmr.msra.gmra.mxu2 %v1570_v23 }
 0x667   : > { %v1644_v34 = vpop.f32.mrf.mxu2 }
 0x668   : > { %v1650_v21 = vmul.f32 %v1649_v33, %v1644_v34 }
 0x66a   : > { %v1652_v35 = vadd.f32 %v1650_v21, %v2942_v6 }
 0x66c   : > { %1654 = vst.msk [vmem:[%s733_s17] sm:$0xff] %vm761_vm0, %v1652_v35 }
 0x66f   : > { %v1646_v19 = vpop.f32.mrf.mxu2 }
 0x670   : > { %v1651_v36 = vmul.f32 %v1649_v33, %v1646_v19 }
 0x672   : > { %v1653_v46 = vadd.f32 %v1651_v36, %v2948_v15 }
 0x674   : > { %1655 = vst.msk [vmem:[%s733_s17 + $0x8] sm:$0xff] %vm761_vm0, %v1653_v46 }
 0x675   : > { %2377 = shalt.err (!%p2374_p0)
}
 0x676   : > { %s2460_s22 = smov 128   ;;  %s3091_s17 = smov 8  }
 0x677   : > { %2009 = dma.vmem_to_hbm [thread:$0]  (%p2657_p5), %s1672_s6, 256, %s1674_s23, %s1657_s30, %s2460_s22, %s2460_s22, %s3091_s17  }
 0x678 PF: > { %s1688_s3 = sand.u32 1, %s2424_s27   ;;  %p2032_p2 = pnand %p1852_p4, %p2665_p7 }
 0x679   : > { %s1689_s14 = scalar_lea.sflag [#allocation5], %s1688_s3 }
 0x67a   : > { %p2033_p6 = pneg %p2032_p2 }
 0x67c   : > { %2419 = dma.done.wait (%p2033_p6), %s1689_s14, 256  }
 0x67d   : > { %2421 = vsyncadd (%p2033_p6), %s1689_s14, 4294967040  ;;  %s37_s19 = sadd.s32 1, %s2444_s19   ;;  %s3092_s27 = smov %s2428_s28 }
 0x67e   : > { %p34_p8 = scmp.ge.s32.totalorder %s37_s19, 4   ;;  %s3093_s28 = smov %s2432_s29 }
 0x67f   : > { %s3094_s29 = smov %s2663_s18  ;;  %s3095_s30 = smov %s2440_s0 }
 0x680   : > { %s3096_s0 = smov %s3098_s26  ;;  %36 = sbr.rel (!%p34_p8) target bundleno = 22 (0x16), region = 166 }
 0x685   :  { %1695 = vsyncpa [#allocation4], 1 }
 0x686   :  { %1697 = vsyncpa [#allocation4 + $0x1], 1 }
 0x687   :  { %1698 = vsyncpa [#allocation7], 1 }
 0x688   :  { %1699 = vsyncpa [#allocation10], 1 }
 0x689   :  { %1700 = vsyncpa [#allocation13], 1 }
 0x68a   :  { %1701 = vsyncpa [#allocation5], 1 }
 0x68b   :  { %1703 = vsyncpa [#allocation5 + $0x1], 1 }

</bundles_post_ra>
